<compile_context>
chip_gen: v5e
topology: v5e:2x2
jax: 0.10.0
libtpu: 0.0.40
codegen_flags: <defaults>
</compile_context>

<pallas_src>
import math
import jax
import jax.numpy as jnp
from jax import lax
from jax.experimental import pallas as pl
from jax.experimental.pallas import tpu as pltpu

# ---------------- Config (small LlamaConfig analogue) ----------------
BATCH = 2
SEQ = 8
HIDDEN = 32
NUM_HEADS = 4
HEAD_DIM = HIDDEN // NUM_HEADS          # 8
HALF = HEAD_DIM // 2                    # 4
INTER = 64
NUM_LAYERS = 2
RMS_EPS = 1e-6
ROPE_THETA = 10000.0
BS = BATCH * SEQ                        # 16 rows = 2 full f32 sublane groups
NEG_INF = -1e30


# ---------------- in-kernel helpers ----------------
def _rmsnorm(x, w):
    # HF LlamaRMSNorm: x * rsqrt(mean(x^2) + eps) * weight (all f32 here)
    var = jnp.mean(x * x, axis=-1, keepdims=True)
    return x * lax.rsqrt(var + RMS_EPS) * w


# ---------------- fused whole-model Pallas kernel ----------------
def llama_fused_kernel(x_ref, cos2_ref, sin2_ref, bias_ref,
                       ln1_ref, wproj_ref,
                       ln2_ref, wgu_ref, wd_ref, lnf_ref,
                       o_ref):
    H = HIDDEN
    x = x_ref[...]          # (BS, H)      batch folded into rows
    cos2 = cos2_ref[...]    # (BS, 2H)     RoPE tables tiled for [q|k] jointly
    sin2 = sin2_ref[...]
    bias4 = bias_ref[...]   # (4*BS, BS)   block-diag causal bias, tiled over heads

    for l in range(NUM_LAYERS):                      # static unroll (L=2)
        # --- input RMSNorm + fused projection (q|k|qR|kR|Wvo_0..Wvo_3) ---
        h = _rmsnorm(x, ln1_ref[l])
        proj = jnp.dot(h, wproj_ref[l],
                       preferred_element_type=jnp.float32)          # (BS, 8H) = (16, 256)

        # RoPE on q and k in one 64-lane-wide FMA (scale already folded into Wq)
        qk = proj[:, :2 * H] * cos2 + proj[:, 2 * H:4 * H] * sin2   # (BS, 2H)

        # --- per-head scores (no transpose materialized), stacked softmax ---
        sc_list = []
        for hh in range(NUM_HEADS):                  # static unroll (4 heads)
            q_h = qk[:, hh * HEAD_DIM:(hh + 1) * HEAD_DIM]          # (BS, 8)
            k_h = qk[:, H + hh * HEAD_DIM:H + (hh + 1) * HEAD_DIM]  # (BS, 8)
            sc_list.append(lax.dot_general(
                q_h, k_h, (((1,), (1,)), ((), ())),
                preferred_element_type=jnp.float32))                # (BS, BS)
        sc = jnp.concatenate(sc_list, axis=0) + bias4               # (4*BS, BS)
        sc = sc - jnp.max(sc, axis=-1, keepdims=True)
        p = jnp.exp(sc)
        p = p * pl.reciprocal(jnp.sum(p, axis=-1, keepdims=True), approx=True)

        # --- attention output: p_h @ (V_h @ Wo_h)  (Wo pre-folded into V) ---
        attn = jnp.zeros((BS, H), jnp.float32)
        for hh in range(NUM_HEADS):
            p_h = p[hh * BS:(hh + 1) * BS, :]                       # (BS, BS)
            vprime_h = proj[:, (4 + hh) * H:(5 + hh) * H]           # (BS, H)
            attn = attn + jnp.dot(p_h, vprime_h,
                                  preferred_element_type=jnp.float32)
        x = x + attn

        # --- post-attention RMSNorm + SwiGLU MLP (fused gate/up, 128-lane wide) ---
        h2 = _rmsnorm(x, ln2_ref[l])
        gu = jnp.dot(h2, wgu_ref[l], preferred_element_type=jnp.float32)  # (BS, 2*INTER)
        g = gu[:, :INTER]
        u = gu[:, INTER:]
        act = g * jax.nn.sigmoid(g) * u                                   # SiLU(g) * up
        x = x + jnp.dot(act, wd_ref[l], preferred_element_type=jnp.float32)

    # --- final RMSNorm ---
    o_ref[...] = _rmsnorm(x, lnf_ref[...])


# ---------------- host-side packing (glue, plain JAX) ----------------
def rope_tables(seq, head_dim, theta):
    inv_freq = 1.0 / (theta ** (jnp.arange(0, head_dim, 2, dtype=jnp.float32) / head_dim))
    pos = jnp.arange(seq, dtype=jnp.float32)
    freqs = jnp.outer(pos, inv_freq)                 # (S, head_dim/2)
    emb = jnp.concatenate([freqs, freqs], axis=-1)   # (S, head_dim)
    return jnp.cos(emb), jnp.sin(emb)


def _rotate_half_matrix():
    # Block-diagonal permutation(+sign) matrix R so that  x @ R == rotate_half(x)
    # for head-contiguous (…, HIDDEN) layouts.
    eye = jnp.eye(HALF, dtype=jnp.float32)
    R = jnp.zeros((HIDDEN, HIDDEN), jnp.float32)
    for h in range(NUM_HEADS):
        o = h * HEAD_DIM
        R = R.at[o:o + HALF, o + HALF:o + HEAD_DIM].set(eye)    # x1 -> second half
        R = R.at[o + HALF:o + HEAD_DIM, o:o + HALF].set(-eye)   # -x2 -> first half
    return R


def pack_params(layer_params, final_w, cos, sin):
    R = _rotate_half_matrix()
    scale = 1.0 / math.sqrt(HEAD_DIM)
    wproj, ln1, ln2, wgu, wd = [], [], [], [], []
    for p in layer_params:
        wq_s = p["wq"] * scale                       # fold 1/sqrt(d) into Wq
        blocks = [wq_s, p["wk"], wq_s @ R, p["wk"] @ R]
        for hh in range(NUM_HEADS):                  # fold Wo into V per head
            sl = slice(hh * HEAD_DIM, (hh + 1) * HEAD_DIM)
            blocks.append(p["wv"][:, sl] @ p["wo"][sl, :])          # (H, H)
        wproj.append(jnp.concatenate(blocks, axis=1))               # (H, 8H) = (32, 256)
        ln1.append(p["ln1"])
        ln2.append(p["ln2"])
        wgu.append(jnp.concatenate([p["wg"], p["wu"]], axis=1))     # (H, 2*INTER)
        wd.append(p["wd"])

    # RoPE tables tiled per head and per batch row -> (B*S, HIDDEN), then
    # duplicated once more so q and k are rotated with a single (BS, 2H) FMA.
    cos_f = jnp.tile(jnp.tile(cos, (1, NUM_HEADS)), (BATCH, 1))
    sin_f = jnp.tile(jnp.tile(sin, (1, NUM_HEADS)), (BATCH, 1))
    cos2 = jnp.concatenate([cos_f, cos_f], axis=1)                  # (BS, 2H)
    sin2 = jnp.concatenate([sin_f, sin_f], axis=1)

    # block-diagonal causal additive bias over folded batch rows, tiled over heads
    idx = jnp.arange(BS)
    b_i, s_i = idx // SEQ, idx % SEQ
    valid = (b_i[:, None] == b_i[None, :]) & (s_i[None, :] <= s_i[:, None])
    bias = jnp.where(valid, 0.0, NEG_INF).astype(jnp.float32)       # (BS, BS)
    bias4 = jnp.tile(bias, (NUM_HEADS, 1))                          # (4*BS, BS)

    return {
        "cos2": cos2, "sin2": sin2, "bias4": bias4,
        "ln1": jnp.stack(ln1), "wproj": jnp.stack(wproj),
        "ln2": jnp.stack(ln2), "wgu": jnp.stack(wgu), "wd": jnp.stack(wd),
        "lnf": final_w,
    }


# ---------------- wrapper (single pallas_call, everything VMEM-resident) ----------------
@jax.jit
def llama2_already_emb_forward(inputs_embeds, packed):
    B, S, H = inputs_embeds.shape
    x2d = inputs_embeds.reshape(B * S, H)
    vmem = pl.BlockSpec(memory_space=pltpu.MemorySpace.VMEM)
    out2d = pl.pallas_call(
        llama_fused_kernel,
        out_shape=jax.ShapeDtypeStruct((B * S, H), jnp.float32),
        in_specs=[vmem] * 10,
        out_specs=vmem,
    )(x2d, packed["cos2"], packed["sin2"], packed["bias4"],
      packed["ln1"], packed["wproj"],
      packed["ln2"], packed["wgu"], packed["wd"], packed["lnf"])
    return out2d.reshape(B, S, H)


# ---------------- parameter construction (raw HF-like weights) ----------------
def init_params(key):
    layer_params = []
    for _ in range(NUM_LAYERS):
        keys = jax.random.split(key, 8)
        key = keys[-1]
        p = {
            "ln1": jnp.ones((1, HIDDEN), jnp.float32),
            "wq": 0.02 * jax.random.normal(keys[0], (HIDDEN, HIDDEN), jnp.float32),
            "wk": 0.02 * jax.random.normal(keys[1], (HIDDEN, HIDDEN), jnp.float32),
            "wv": 0.02 * jax.random.normal(keys[2], (HIDDEN, HIDDEN), jnp.float32),
            "wo": 0.02 * jax.random.normal(keys[3], (HIDDEN, HIDDEN), jnp.float32),
            "ln2": jnp.ones((1, HIDDEN), jnp.float32),
            "wg": 0.02 * jax.random.normal(keys[4], (HIDDEN, INTER), jnp.float32),
            "wu": 0.02 * jax.random.normal(keys[5], (HIDDEN, INTER), jnp.float32),
            "wd": 0.02 * jax.random.normal(keys[6], (INTER, HIDDEN), jnp.float32),
        }
        layer_params.append(p)
    final_w = jnp.ones((1, HIDDEN), jnp.float32)
    return layer_params, final_w, key


# ---------------- pure-JAX reference (sanity check) ----------------
def ref_forward(x, layer_params, final_w, cos, sin):
    def rms(v, w):
        return v * lax.rsqrt(jnp.mean(v * v, -1, keepdims=True) + RMS_EPS) * w

    def rope(v):
        rot = jnp.concatenate([-v[..., HALF:], v[..., :HALF]], axis=-1)
        return v * cos[None, :, None, :] + rot * sin[None, :, None, :]

    B, S, H = x.shape
    mask = jnp.tril(jnp.ones((S, S), bool))
    for p in layer_params:
        h = rms(x, p["ln1"])
        q = (h @ p["wq"]).reshape(B, S, NUM_HEADS, HEAD_DIM)
        k = (h @ p["wk"]).reshape(B, S, NUM_HEADS, HEAD_DIM)
        v = (h @ p["wv"]).reshape(B, S, NUM_HEADS, HEAD_DIM)
        q, k = rope(q), rope(k)
        sc = jnp.einsum("bqnd,bknd->bnqk", q, k) / math.sqrt(HEAD_DIM)
        sc = jnp.where(mask, sc, NEG_INF)
        pr = jax.nn.softmax(sc, axis=-1)
        o = jnp.einsum("bnqk,bknd->bqnd", pr, v).reshape(B, S, H)
        x = x + o @ p["wo"]
        h2 = rms(x, p["ln2"])
        g = h2 @ p["wg"]
        x = x + ((g * jax.nn.sigmoid(g)) * (h2 @ p["wu"])) @ p["wd"]
    return rms(x, final_w)


if __name__ == "__main__":
    key = jax.random.PRNGKey(0)
    key, sub = jax.random.split(key)
    # `input_ids` here are actually pre-computed embeddings (inputs_embeds)
    inputs_embeds = jax.random.normal(sub, (BATCH, SEQ, HIDDEN), jnp.float32)

    layer_params, final_w, _ = init_params(key)
    cos, sin = rope_tables(SEQ, HEAD_DIM, ROPE_THETA)
    packed = pack_params(layer_params, final_w, cos, sin)

    out = llama2_already_emb_forward(inputs_embeds, packed)
    out = jax.block_until_ready(out)

    ref = ref_forward(inputs_embeds, layer_params, final_w, cos, sin)
    assert out.shape == (BATCH, SEQ, HIDDEN)
    assert jnp.allclose(out, ref, rtol=1e-3, atol=1e-3)

    print("KERNEL_OK")
</pallas_src>

<mosaic_0001>
module attributes {stable_mosaic.version = 11 : i64} {
  func.func @llama_fused_kernel(%arg0: memref<16x32xf32, #tpu.memory_space<vmem>>, %arg1: memref<16x64xf32, #tpu.memory_space<vmem>>, %arg2: memref<16x64xf32, #tpu.memory_space<vmem>>, %arg3: memref<64x16xf32, #tpu.memory_space<vmem>>, %arg4: memref<2x1x32xf32, #tpu.memory_space<vmem>>, %arg5: memref<2x32x256xf32, #tpu.memory_space<vmem>>, %arg6: memref<2x1x32xf32, #tpu.memory_space<vmem>>, %arg7: memref<2x32x128xf32, #tpu.memory_space<vmem>>, %arg8: memref<2x64x32xf32, #tpu.memory_space<vmem>>, %arg9: memref<1x32xf32, #tpu.memory_space<vmem>>, %arg10: memref<16x32xf32, #tpu.memory_space<vmem>>) attributes {dimension_semantics = [], scalar_prefetch = 0 : i64, scratch_operands = 0 : i64, tpu.core_type = #tpu.core_type<tc>} {
    %c0 = arith.constant 0 : index
    %c0_0 = arith.constant 0 : index
    %0 = vector.load %arg0[%c0, %c0_0] : memref<16x32xf32, #tpu.memory_space<vmem>>, vector<16x32xf32>
    %c0_1 = arith.constant 0 : index
    %c0_2 = arith.constant 0 : index
    %1 = vector.load %arg1[%c0_1, %c0_2] : memref<16x64xf32, #tpu.memory_space<vmem>>, vector<16x64xf32>
    %c0_3 = arith.constant 0 : index
    %c0_4 = arith.constant 0 : index
    %2 = vector.load %arg2[%c0_3, %c0_4] : memref<16x64xf32, #tpu.memory_space<vmem>>, vector<16x64xf32>
    %c0_5 = arith.constant 0 : index
    %c0_6 = arith.constant 0 : index
    %3 = vector.load %arg3[%c0_5, %c0_6] : memref<64x16xf32, #tpu.memory_space<vmem>>, vector<64x16xf32>
    %c0_7 = arith.constant 0 : index
    %c0_8 = arith.constant 0 : index
    %c0_9 = arith.constant 0 : index
    %4 = vector.load %arg4[%c0_7, %c0_8, %c0_9] : memref<2x1x32xf32, #tpu.memory_space<vmem>>, vector<1x1x32xf32>
    %5 = vector.shape_cast %4 : vector<1x1x32xf32> to vector<1x32xf32>
    %6 = arith.mulf %0, %0 : vector<16x32xf32>
    %cst = arith.constant dense<0.000000e+00> : vector<16xf32>
    %7 = vector.multi_reduction <add>, %6, %cst [1] : vector<16x32xf32> to vector<16xf32>
    %8 = vector.shape_cast %7 : vector<16xf32> to vector<16x1xf32>
    %cst_10 = arith.constant 3.200000e+01 : f32
    %9 = vector.broadcast %cst_10 : f32 to vector<16x1xf32>
    %10 = arith.divf %8, %9 : vector<16x1xf32>
    %cst_11 = arith.constant 9.99999997E-7 : f32
    %11 = vector.broadcast %cst_11 : f32 to vector<16x1xf32>
    %12 = arith.addf %10, %11 : vector<16x1xf32>
    %13 = math.rsqrt %12 : vector<16x1xf32>
    %14 = vector.broadcast %13 : vector<16x1xf32> to vector<16x32xf32>
    %15 = arith.mulf %0, %14 : vector<16x32xf32>
    %16 = vector.broadcast %5 : vector<1x32xf32> to vector<16x32xf32>
    %17 = arith.mulf %15, %16 : vector<16x32xf32>
    %c0_12 = arith.constant 0 : index
    %c0_13 = arith.constant 0 : index
    %c0_14 = arith.constant 0 : index
    %18 = vector.load %arg5[%c0_12, %c0_13, %c0_14] : memref<2x32x256xf32, #tpu.memory_space<vmem>>, vector<1x32x256xf32>
    %19 = vector.shape_cast %18 : vector<1x32x256xf32> to vector<32x256xf32>
    %cst_15 = arith.constant dense<0.000000e+00> : vector<16x256xf32>
    %20 = tpu.matmul %17, %19, %cst_15 {dimension_numbers = #tpu.dot_dimension_numbers<[1], [0], [0], [1], [0, 0, 1, 1], [], []>} : vector<16x32xf32>, vector<32x256xf32>, vector<16x256xf32> -> vector<16x256xf32>
    %21 = vector.extract_strided_slice %20 {offsets = [0, 0], sizes = [16, 64], strides = [1, 1]} : vector<16x256xf32> to vector<16x64xf32>
    %22 = arith.mulf %21, %1 : vector<16x64xf32>
    %23 = vector.extract_strided_slice %20 {offsets = [0, 64], sizes = [16, 64], strides = [1, 1]} : vector<16x256xf32> to vector<16x64xf32>
    %24 = arith.mulf %23, %2 : vector<16x64xf32>
    %25 = arith.addf %22, %24 : vector<16x64xf32>
    %26 = vector.extract_strided_slice %25 {offsets = [0, 0], sizes = [16, 8], strides = [1, 1]} : vector<16x64xf32> to vector<16x8xf32>
    %27 = vector.extract_strided_slice %25 {offsets = [0, 32], sizes = [16, 8], strides = [1, 1]} : vector<16x64xf32> to vector<16x8xf32>
    %cst_16 = arith.constant dense<0.000000e+00> : vector<16x16xf32>
    %28 = tpu.matmul %26, %27, %cst_16 {dimension_numbers = #tpu.dot_dimension_numbers<[1], [1], [0], [0], [0, 0, 1, 0], [], []>} : vector<16x8xf32>, vector<16x8xf32>, vector<16x16xf32> -> vector<16x16xf32>
    %29 = vector.extract_strided_slice %25 {offsets = [0, 8], sizes = [16, 8], strides = [1, 1]} : vector<16x64xf32> to vector<16x8xf32>
    %30 = vector.extract_strided_slice %25 {offsets = [0, 40], sizes = [16, 8], strides = [1, 1]} : vector<16x64xf32> to vector<16x8xf32>
    %cst_17 = arith.constant dense<0.000000e+00> : vector<16x16xf32>
    %31 = tpu.matmul %29, %30, %cst_17 {dimension_numbers = #tpu.dot_dimension_numbers<[1], [1], [0], [0], [0, 0, 1, 0], [], []>} : vector<16x8xf32>, vector<16x8xf32>, vector<16x16xf32> -> vector<16x16xf32>
    %32 = vector.extract_strided_slice %25 {offsets = [0, 16], sizes = [16, 8], strides = [1, 1]} : vector<16x64xf32> to vector<16x8xf32>
    %33 = vector.extract_strided_slice %25 {offsets = [0, 48], sizes = [16, 8], strides = [1, 1]} : vector<16x64xf32> to vector<16x8xf32>
    %cst_18 = arith.constant dense<0.000000e+00> : vector<16x16xf32>
    %34 = tpu.matmul %32, %33, %cst_18 {dimension_numbers = #tpu.dot_dimension_numbers<[1], [1], [0], [0], [0, 0, 1, 0], [], []>} : vector<16x8xf32>, vector<16x8xf32>, vector<16x16xf32> -> vector<16x16xf32>
    %35 = vector.extract_strided_slice %25 {offsets = [0, 24], sizes = [16, 8], strides = [1, 1]} : vector<16x64xf32> to vector<16x8xf32>
    %36 = vector.extract_strided_slice %25 {offsets = [0, 56], sizes = [16, 8], strides = [1, 1]} : vector<16x64xf32> to vector<16x8xf32>
    %cst_19 = arith.constant dense<0.000000e+00> : vector<16x16xf32>
    %37 = tpu.matmul %35, %36, %cst_19 {dimension_numbers = #tpu.dot_dimension_numbers<[1], [1], [0], [0], [0, 0, 1, 0], [], []>} : vector<16x8xf32>, vector<16x8xf32>, vector<16x16xf32> -> vector<16x16xf32>
    %38 = tpu.concatenate %28, %31, %34, %37 in 0 : vector<16x16xf32>, vector<16x16xf32>, vector<16x16xf32>, vector<16x16xf32> -> vector<64x16xf32>
    %39 = arith.addf %38, %3 : vector<64x16xf32>
    %cst_20 = arith.constant dense<0xFF800000> : vector<64xf32>
    %40 = vector.multi_reduction <maximumf>, %39, %cst_20 [1] : vector<64x16xf32> to vector<64xf32>
    %41 = vector.shape_cast %40 : vector<64xf32> to vector<64x1xf32>
    %42 = vector.broadcast %41 : vector<64x1xf32> to vector<64x16xf32>
    %43 = arith.subf %39, %42 : vector<64x16xf32>
    %44 = math.exp %43 : vector<64x16xf32>
    %cst_21 = arith.constant dense<0.000000e+00> : vector<64xf32>
    %45 = vector.multi_reduction <add>, %44, %cst_21 [1] : vector<64x16xf32> to vector<64xf32>
    %46 = vector.shape_cast %45 : vector<64xf32> to vector<64x1xf32>
    %47 = tpu.reciprocal %46 {approx = true} : vector<64x1xf32> -> vector<64x1xf32>
    %48 = vector.broadcast %47 : vector<64x1xf32> to vector<64x16xf32>
    %49 = arith.mulf %44, %48 : vector<64x16xf32>
    %cst_22 = arith.constant 0.000000e+00 : f32
    %50 = vector.broadcast %cst_22 : f32 to vector<16x32xf32>
    %51 = vector.extract_strided_slice %49 {offsets = [0, 0], sizes = [16, 16], strides = [1, 1]} : vector<64x16xf32> to vector<16x16xf32>
    %52 = vector.extract_strided_slice %20 {offsets = [0, 128], sizes = [16, 32], strides = [1, 1]} : vector<16x256xf32> to vector<16x32xf32>
    %cst_23 = arith.constant dense<0.000000e+00> : vector<16x32xf32>
    %53 = tpu.matmul %51, %52, %cst_23 {dimension_numbers = #tpu.dot_dimension_numbers<[1], [0], [0], [1], [0, 0, 1, 1], [], []>} : vector<16x16xf32>, vector<16x32xf32>, vector<16x32xf32> -> vector<16x32xf32>
    %54 = arith.addf %50, %53 : vector<16x32xf32>
    %55 = vector.extract_strided_slice %49 {offsets = [16, 0], sizes = [16, 16], strides = [1, 1]} : vector<64x16xf32> to vector<16x16xf32>
    %56 = vector.extract_strided_slice %20 {offsets = [0, 160], sizes = [16, 32], strides = [1, 1]} : vector<16x256xf32> to vector<16x32xf32>
    %cst_24 = arith.constant dense<0.000000e+00> : vector<16x32xf32>
    %57 = tpu.matmul %55, %56, %cst_24 {dimension_numbers = #tpu.dot_dimension_numbers<[1], [0], [0], [1], [0, 0, 1, 1], [], []>} : vector<16x16xf32>, vector<16x32xf32>, vector<16x32xf32> -> vector<16x32xf32>
    %58 = arith.addf %54, %57 : vector<16x32xf32>
    %59 = vector.extract_strided_slice %49 {offsets = [32, 0], sizes = [16, 16], strides = [1, 1]} : vector<64x16xf32> to vector<16x16xf32>
    %60 = vector.extract_strided_slice %20 {offsets = [0, 192], sizes = [16, 32], strides = [1, 1]} : vector<16x256xf32> to vector<16x32xf32>
    %cst_25 = arith.constant dense<0.000000e+00> : vector<16x32xf32>
    %61 = tpu.matmul %59, %60, %cst_25 {dimension_numbers = #tpu.dot_dimension_numbers<[1], [0], [0], [1], [0, 0, 1, 1], [], []>} : vector<16x16xf32>, vector<16x32xf32>, vector<16x32xf32> -> vector<16x32xf32>
    %62 = arith.addf %58, %61 : vector<16x32xf32>
    %63 = vector.extract_strided_slice %49 {offsets = [48, 0], sizes = [16, 16], strides = [1, 1]} : vector<64x16xf32> to vector<16x16xf32>
    %64 = vector.extract_strided_slice %20 {offsets = [0, 224], sizes = [16, 32], strides = [1, 1]} : vector<16x256xf32> to vector<16x32xf32>
    %cst_26 = arith.constant dense<0.000000e+00> : vector<16x32xf32>
    %65 = tpu.matmul %63, %64, %cst_26 {dimension_numbers = #tpu.dot_dimension_numbers<[1], [0], [0], [1], [0, 0, 1, 1], [], []>} : vector<16x16xf32>, vector<16x32xf32>, vector<16x32xf32> -> vector<16x32xf32>
    %66 = arith.addf %62, %65 : vector<16x32xf32>
    %67 = arith.addf %0, %66 : vector<16x32xf32>
    %c0_27 = arith.constant 0 : index
    %c0_28 = arith.constant 0 : index
    %c0_29 = arith.constant 0 : index
    %68 = vector.load %arg6[%c0_27, %c0_28, %c0_29] : memref<2x1x32xf32, #tpu.memory_space<vmem>>, vector<1x1x32xf32>
    %69 = vector.shape_cast %68 : vector<1x1x32xf32> to vector<1x32xf32>
    %70 = arith.mulf %67, %67 : vector<16x32xf32>
    %cst_30 = arith.constant dense<0.000000e+00> : vector<16xf32>
    %71 = vector.multi_reduction <add>, %70, %cst_30 [1] : vector<16x32xf32> to vector<16xf32>
    %72 = vector.shape_cast %71 : vector<16xf32> to vector<16x1xf32>
    %cst_31 = arith.constant 3.200000e+01 : f32
    %73 = vector.broadcast %cst_31 : f32 to vector<16x1xf32>
    %74 = arith.divf %72, %73 : vector<16x1xf32>
    %cst_32 = arith.constant 9.99999997E-7 : f32
    %75 = vector.broadcast %cst_32 : f32 to vector<16x1xf32>
    %76 = arith.addf %74, %75 : vector<16x1xf32>
    %77 = math.rsqrt %76 : vector<16x1xf32>
    %78 = vector.broadcast %77 : vector<16x1xf32> to vector<16x32xf32>
    %79 = arith.mulf %67, %78 : vector<16x32xf32>
    %80 = vector.broadcast %69 : vector<1x32xf32> to vector<16x32xf32>
    %81 = arith.mulf %79, %80 : vector<16x32xf32>
    %c0_33 = arith.constant 0 : index
    %c0_34 = arith.constant 0 : index
    %c0_35 = arith.constant 0 : index
    %82 = vector.load %arg7[%c0_33, %c0_34, %c0_35] : memref<2x32x128xf32, #tpu.memory_space<vmem>>, vector<1x32x128xf32>
    %83 = vector.shape_cast %82 : vector<1x32x128xf32> to vector<32x128xf32>
    %cst_36 = arith.constant dense<0.000000e+00> : vector<16x128xf32>
    %84 = tpu.matmul %81, %83, %cst_36 {dimension_numbers = #tpu.dot_dimension_numbers<[1], [0], [0], [1], [0, 0, 1, 1], [], []>} : vector<16x32xf32>, vector<32x128xf32>, vector<16x128xf32> -> vector<16x128xf32>
    %85 = vector.extract_strided_slice %84 {offsets = [0, 0], sizes = [16, 64], strides = [1, 1]} : vector<16x128xf32> to vector<16x64xf32>
    %86 = vector.extract_strided_slice %84 {offsets = [0, 64], sizes = [16, 64], strides = [1, 1]} : vector<16x128xf32> to vector<16x64xf32>
    %87 = arith.negf %85 : vector<16x64xf32>
    %88 = math.exp %87 : vector<16x64xf32>
    %cst_37 = arith.constant 1.000000e+00 : f32
    %89 = vector.broadcast %cst_37 : f32 to vector<16x64xf32>
    %90 = arith.addf %89, %88 : vector<16x64xf32>
    %91 = arith.divf %89, %90 : vector<16x64xf32>
    %92 = arith.mulf %85, %91 : vector<16x64xf32>
    %93 = arith.mulf %92, %86 : vector<16x64xf32>
    %c0_38 = arith.constant 0 : index
    %c0_39 = arith.constant 0 : index
    %c0_40 = arith.constant 0 : index
    %94 = vector.load %arg8[%c0_38, %c0_39, %c0_40] : memref<2x64x32xf32, #tpu.memory_space<vmem>>, vector<1x64x32xf32>
    %95 = vector.shape_cast %94 : vector<1x64x32xf32> to vector<64x32xf32>
    %cst_41 = arith.constant dense<0.000000e+00> : vector<16x32xf32>
    %96 = tpu.matmul %93, %95, %cst_41 {dimension_numbers = #tpu.dot_dimension_numbers<[1], [0], [0], [1], [0, 0, 1, 1], [], []>} : vector<16x64xf32>, vector<64x32xf32>, vector<16x32xf32> -> vector<16x32xf32>
    %97 = arith.addf %67, %96 : vector<16x32xf32>
    %c1 = arith.constant 1 : index
    %c0_42 = arith.constant 0 : index
    %c0_43 = arith.constant 0 : index
    %98 = vector.load %arg4[%c1, %c0_42, %c0_43] : memref<2x1x32xf32, #tpu.memory_space<vmem>>, vector<1x1x32xf32>
    %99 = vector.shape_cast %98 : vector<1x1x32xf32> to vector<1x32xf32>
    %100 = arith.mulf %97, %97 : vector<16x32xf32>
    %cst_44 = arith.constant dense<0.000000e+00> : vector<16xf32>
    %101 = vector.multi_reduction <add>, %100, %cst_44 [1] : vector<16x32xf32> to vector<16xf32>
    %102 = vector.shape_cast %101 : vector<16xf32> to vector<16x1xf32>
    %cst_45 = arith.constant 3.200000e+01 : f32
    %103 = vector.broadcast %cst_45 : f32 to vector<16x1xf32>
    %104 = arith.divf %102, %103 : vector<16x1xf32>
    %cst_46 = arith.constant 9.99999997E-7 : f32
    %105 = vector.broadcast %cst_46 : f32 to vector<16x1xf32>
    %106 = arith.addf %104, %105 : vector<16x1xf32>
    %107 = math.rsqrt %106 : vector<16x1xf32>
    %108 = vector.broadcast %107 : vector<16x1xf32> to vector<16x32xf32>
    %109 = arith.mulf %97, %108 : vector<16x32xf32>
    %110 = vector.broadcast %99 : vector<1x32xf32> to vector<16x32xf32>
    %111 = arith.mulf %109, %110 : vector<16x32xf32>
    %c1_47 = arith.constant 1 : index
    %c0_48 = arith.constant 0 : index
    %c0_49 = arith.constant 0 : index
    %112 = vector.load %arg5[%c1_47, %c0_48, %c0_49] : memref<2x32x256xf32, #tpu.memory_space<vmem>>, vector<1x32x256xf32>
    %113 = vector.shape_cast %112 : vector<1x32x256xf32> to vector<32x256xf32>
    %cst_50 = arith.constant dense<0.000000e+00> : vector<16x256xf32>
    %114 = tpu.matmul %111, %113, %cst_50 {dimension_numbers = #tpu.dot_dimension_numbers<[1], [0], [0], [1], [0, 0, 1, 1], [], []>} : vector<16x32xf32>, vector<32x256xf32>, vector<16x256xf32> -> vector<16x256xf32>
    %115 = vector.extract_strided_slice %114 {offsets = [0, 0], sizes = [16, 64], strides = [1, 1]} : vector<16x256xf32> to vector<16x64xf32>
    %116 = arith.mulf %115, %1 : vector<16x64xf32>
    %117 = vector.extract_strided_slice %114 {offsets = [0, 64], sizes = [16, 64], strides = [1, 1]} : vector<16x256xf32> to vector<16x64xf32>
    %118 = arith.mulf %117, %2 : vector<16x64xf32>
    %119 = arith.addf %116, %118 : vector<16x64xf32>
    %120 = vector.extract_strided_slice %119 {offsets = [0, 0], sizes = [16, 8], strides = [1, 1]} : vector<16x64xf32> to vector<16x8xf32>
    %121 = vector.extract_strided_slice %119 {offsets = [0, 32], sizes = [16, 8], strides = [1, 1]} : vector<16x64xf32> to vector<16x8xf32>
    %cst_51 = arith.constant dense<0.000000e+00> : vector<16x16xf32>
    %122 = tpu.matmul %120, %121, %cst_51 {dimension_numbers = #tpu.dot_dimension_numbers<[1], [1], [0], [0], [0, 0, 1, 0], [], []>} : vector<16x8xf32>, vector<16x8xf32>, vector<16x16xf32> -> vector<16x16xf32>
    %123 = vector.extract_strided_slice %119 {offsets = [0, 8], sizes = [16, 8], strides = [1, 1]} : vector<16x64xf32> to vector<16x8xf32>
    %124 = vector.extract_strided_slice %119 {offsets = [0, 40], sizes = [16, 8], strides = [1, 1]} : vector<16x64xf32> to vector<16x8xf32>
    %cst_52 = arith.constant dense<0.000000e+00> : vector<16x16xf32>
    %125 = tpu.matmul %123, %124, %cst_52 {dimension_numbers = #tpu.dot_dimension_numbers<[1], [1], [0], [0], [0, 0, 1, 0], [], []>} : vector<16x8xf32>, vector<16x8xf32>, vector<16x16xf32> -> vector<16x16xf32>
    %126 = vector.extract_strided_slice %119 {offsets = [0, 16], sizes = [16, 8], strides = [1, 1]} : vector<16x64xf32> to vector<16x8xf32>
    %127 = vector.extract_strided_slice %119 {offsets = [0, 48], sizes = [16, 8], strides = [1, 1]} : vector<16x64xf32> to vector<16x8xf32>
    %cst_53 = arith.constant dense<0.000000e+00> : vector<16x16xf32>
    %128 = tpu.matmul %126, %127, %cst_53 {dimension_numbers = #tpu.dot_dimension_numbers<[1], [1], [0], [0], [0, 0, 1, 0], [], []>} : vector<16x8xf32>, vector<16x8xf32>, vector<16x16xf32> -> vector<16x16xf32>
    %129 = vector.extract_strided_slice %119 {offsets = [0, 24], sizes = [16, 8], strides = [1, 1]} : vector<16x64xf32> to vector<16x8xf32>
    %130 = vector.extract_strided_slice %119 {offsets = [0, 56], sizes = [16, 8], strides = [1, 1]} : vector<16x64xf32> to vector<16x8xf32>
    %cst_54 = arith.constant dense<0.000000e+00> : vector<16x16xf32>
    %131 = tpu.matmul %129, %130, %cst_54 {dimension_numbers = #tpu.dot_dimension_numbers<[1], [1], [0], [0], [0, 0, 1, 0], [], []>} : vector<16x8xf32>, vector<16x8xf32>, vector<16x16xf32> -> vector<16x16xf32>
    %132 = tpu.concatenate %122, %125, %128, %131 in 0 : vector<16x16xf32>, vector<16x16xf32>, vector<16x16xf32>, vector<16x16xf32> -> vector<64x16xf32>
    %133 = arith.addf %132, %3 : vector<64x16xf32>
    %cst_55 = arith.constant dense<0xFF800000> : vector<64xf32>
    %134 = vector.multi_reduction <maximumf>, %133, %cst_55 [1] : vector<64x16xf32> to vector<64xf32>
    %135 = vector.shape_cast %134 : vector<64xf32> to vector<64x1xf32>
    %136 = vector.broadcast %135 : vector<64x1xf32> to vector<64x16xf32>
    %137 = arith.subf %133, %136 : vector<64x16xf32>
    %138 = math.exp %137 : vector<64x16xf32>
    %cst_56 = arith.constant dense<0.000000e+00> : vector<64xf32>
    %139 = vector.multi_reduction <add>, %138, %cst_56 [1] : vector<64x16xf32> to vector<64xf32>
    %140 = vector.shape_cast %139 : vector<64xf32> to vector<64x1xf32>
    %141 = tpu.reciprocal %140 {approx = true} : vector<64x1xf32> -> vector<64x1xf32>
    %142 = vector.broadcast %141 : vector<64x1xf32> to vector<64x16xf32>
    %143 = arith.mulf %138, %142 : vector<64x16xf32>
    %cst_57 = arith.constant 0.000000e+00 : f32
    %144 = vector.broadcast %cst_57 : f32 to vector<16x32xf32>
    %145 = vector.extract_strided_slice %143 {offsets = [0, 0], sizes = [16, 16], strides = [1, 1]} : vector<64x16xf32> to vector<16x16xf32>
    %146 = vector.extract_strided_slice %114 {offsets = [0, 128], sizes = [16, 32], strides = [1, 1]} : vector<16x256xf32> to vector<16x32xf32>
    %cst_58 = arith.constant dense<0.000000e+00> : vector<16x32xf32>
    %147 = tpu.matmul %145, %146, %cst_58 {dimension_numbers = #tpu.dot_dimension_numbers<[1], [0], [0], [1], [0, 0, 1, 1], [], []>} : vector<16x16xf32>, vector<16x32xf32>, vector<16x32xf32> -> vector<16x32xf32>
    %148 = arith.addf %144, %147 : vector<16x32xf32>
    %149 = vector.extract_strided_slice %143 {offsets = [16, 0], sizes = [16, 16], strides = [1, 1]} : vector<64x16xf32> to vector<16x16xf32>
    %150 = vector.extract_strided_slice %114 {offsets = [0, 160], sizes = [16, 32], strides = [1, 1]} : vector<16x256xf32> to vector<16x32xf32>
    %cst_59 = arith.constant dense<0.000000e+00> : vector<16x32xf32>
    %151 = tpu.matmul %149, %150, %cst_59 {dimension_numbers = #tpu.dot_dimension_numbers<[1], [0], [0], [1], [0, 0, 1, 1], [], []>} : vector<16x16xf32>, vector<16x32xf32>, vector<16x32xf32> -> vector<16x32xf32>
    %152 = arith.addf %148, %151 : vector<16x32xf32>
    %153 = vector.extract_strided_slice %143 {offsets = [32, 0], sizes = [16, 16], strides = [1, 1]} : vector<64x16xf32> to vector<16x16xf32>
    %154 = vector.extract_strided_slice %114 {offsets = [0, 192], sizes = [16, 32], strides = [1, 1]} : vector<16x256xf32> to vector<16x32xf32>
    %cst_60 = arith.constant dense<0.000000e+00> : vector<16x32xf32>
    %155 = tpu.matmul %153, %154, %cst_60 {dimension_numbers = #tpu.dot_dimension_numbers<[1], [0], [0], [1], [0, 0, 1, 1], [], []>} : vector<16x16xf32>, vector<16x32xf32>, vector<16x32xf32> -> vector<16x32xf32>
    %156 = arith.addf %152, %155 : vector<16x32xf32>
    %157 = vector.extract_strided_slice %143 {offsets = [48, 0], sizes = [16, 16], strides = [1, 1]} : vector<64x16xf32> to vector<16x16xf32>
    %158 = vector.extract_strided_slice %114 {offsets = [0, 224], sizes = [16, 32], strides = [1, 1]} : vector<16x256xf32> to vector<16x32xf32>
    %cst_61 = arith.constant dense<0.000000e+00> : vector<16x32xf32>
    %159 = tpu.matmul %157, %158, %cst_61 {dimension_numbers = #tpu.dot_dimension_numbers<[1], [0], [0], [1], [0, 0, 1, 1], [], []>} : vector<16x16xf32>, vector<16x32xf32>, vector<16x32xf32> -> vector<16x32xf32>
    %160 = arith.addf %156, %159 : vector<16x32xf32>
    %161 = arith.addf %97, %160 : vector<16x32xf32>
    %c1_62 = arith.constant 1 : index
    %c0_63 = arith.constant 0 : index
    %c0_64 = arith.constant 0 : index
    %162 = vector.load %arg6[%c1_62, %c0_63, %c0_64] : memref<2x1x32xf32, #tpu.memory_space<vmem>>, vector<1x1x32xf32>
    %163 = vector.shape_cast %162 : vector<1x1x32xf32> to vector<1x32xf32>
    %164 = arith.mulf %161, %161 : vector<16x32xf32>
    %cst_65 = arith.constant dense<0.000000e+00> : vector<16xf32>
    %165 = vector.multi_reduction <add>, %164, %cst_65 [1] : vector<16x32xf32> to vector<16xf32>
    %166 = vector.shape_cast %165 : vector<16xf32> to vector<16x1xf32>
    %cst_66 = arith.constant 3.200000e+01 : f32
    %167 = vector.broadcast %cst_66 : f32 to vector<16x1xf32>
    %168 = arith.divf %166, %167 : vector<16x1xf32>
    %cst_67 = arith.constant 9.99999997E-7 : f32
    %169 = vector.broadcast %cst_67 : f32 to vector<16x1xf32>
    %170 = arith.addf %168, %169 : vector<16x1xf32>
    %171 = math.rsqrt %170 : vector<16x1xf32>
    %172 = vector.broadcast %171 : vector<16x1xf32> to vector<16x32xf32>
    %173 = arith.mulf %161, %172 : vector<16x32xf32>
    %174 = vector.broadcast %163 : vector<1x32xf32> to vector<16x32xf32>
    %175 = arith.mulf %173, %174 : vector<16x32xf32>
    %c1_68 = arith.constant 1 : index
    %c0_69 = arith.constant 0 : index
    %c0_70 = arith.constant 0 : index
    %176 = vector.load %arg7[%c1_68, %c0_69, %c0_70] : memref<2x32x128xf32, #tpu.memory_space<vmem>>, vector<1x32x128xf32>
    %177 = vector.shape_cast %176 : vector<1x32x128xf32> to vector<32x128xf32>
    %cst_71 = arith.constant dense<0.000000e+00> : vector<16x128xf32>
    %178 = tpu.matmul %175, %177, %cst_71 {dimension_numbers = #tpu.dot_dimension_numbers<[1], [0], [0], [1], [0, 0, 1, 1], [], []>} : vector<16x32xf32>, vector<32x128xf32>, vector<16x128xf32> -> vector<16x128xf32>
    %179 = vector.extract_strided_slice %178 {offsets = [0, 0], sizes = [16, 64], strides = [1, 1]} : vector<16x128xf32> to vector<16x64xf32>
    %180 = vector.extract_strided_slice %178 {offsets = [0, 64], sizes = [16, 64], strides = [1, 1]} : vector<16x128xf32> to vector<16x64xf32>
    %181 = arith.negf %179 : vector<16x64xf32>
    %182 = math.exp %181 : vector<16x64xf32>
    %cst_72 = arith.constant 1.000000e+00 : f32
    %183 = vector.broadcast %cst_72 : f32 to vector<16x64xf32>
    %184 = arith.addf %183, %182 : vector<16x64xf32>
    %185 = arith.divf %183, %184 : vector<16x64xf32>
    %186 = arith.mulf %179, %185 : vector<16x64xf32>
    %187 = arith.mulf %186, %180 : vector<16x64xf32>
    %c1_73 = arith.constant 1 : index
    %c0_74 = arith.constant 0 : index
    %c0_75 = arith.constant 0 : index
    %188 = vector.load %arg8[%c1_73, %c0_74, %c0_75] : memref<2x64x32xf32, #tpu.memory_space<vmem>>, vector<1x64x32xf32>
    %189 = vector.shape_cast %188 : vector<1x64x32xf32> to vector<64x32xf32>
    %cst_76 = arith.constant dense<0.000000e+00> : vector<16x32xf32>
    %190 = tpu.matmul %187, %189, %cst_76 {dimension_numbers = #tpu.dot_dimension_numbers<[1], [0], [0], [1], [0, 0, 1, 1], [], []>} : vector<16x64xf32>, vector<64x32xf32>, vector<16x32xf32> -> vector<16x32xf32>
    %191 = arith.addf %161, %190 : vector<16x32xf32>
    %c0_77 = arith.constant 0 : index
    %c0_78 = arith.constant 0 : index
    %192 = vector.load %arg9[%c0_77, %c0_78] : memref<1x32xf32, #tpu.memory_space<vmem>>, vector<1x32xf32>
    %193 = arith.mulf %191, %191 : vector<16x32xf32>
    %cst_79 = arith.constant dense<0.000000e+00> : vector<16xf32>
    %194 = vector.multi_reduction <add>, %193, %cst_79 [1] : vector<16x32xf32> to vector<16xf32>
    %195 = vector.shape_cast %194 : vector<16xf32> to vector<16x1xf32>
    %cst_80 = arith.constant 3.200000e+01 : f32
    %196 = vector.broadcast %cst_80 : f32 to vector<16x1xf32>
    %197 = arith.divf %195, %196 : vector<16x1xf32>
    %cst_81 = arith.constant 9.99999997E-7 : f32
    %198 = vector.broadcast %cst_81 : f32 to vector<16x1xf32>
    %199 = arith.addf %197, %198 : vector<16x1xf32>
    %200 = math.rsqrt %199 : vector<16x1xf32>
    %201 = vector.broadcast %200 : vector<16x1xf32> to vector<16x32xf32>
    %202 = arith.mulf %191, %201 : vector<16x32xf32>
    %203 = vector.broadcast %192 : vector<1x32xf32> to vector<16x32xf32>
    %204 = arith.mulf %202, %203 : vector<16x32xf32>
    %c0_82 = arith.constant 0 : index
    %c0_83 = arith.constant 0 : index
    %205 = vector.load %arg10[%c0_82, %c0_83] : memref<16x32xf32, #tpu.memory_space<vmem>>, vector<16x32xf32>
    tpu.vector_store %arg10[%c0_82, %c0_83], %204 {strides = array<i32>} : memref<16x32xf32, #tpu.memory_space<vmem>>, vector<16x32xf32>,
    return
  }
}

</mosaic_0001>

<bundles_post_ra>
// kernel: llama2_already_emb_forward.1
= control target key start
LH: loop header
LB: loop body
LE: loop exit
PB: predicated region body
PF: predicated region fallthrough
CT: control target
= control target key end

     0   :  { %15 = vsyncpa [#allocation3], 0  ;;  %s2366_s0 = inlined_call_operand.vmem [shape: f32[16,32], index: 0, kind: input, shape index: {}]   ;;  %s2367_s1 = inlined_call_operand.hbm [shape: f32[16,64], index: 1, kind: input, shape index: {}]   ;;  %s2368_s2 = inlined_call_operand.hbm [shape: f32[16,64], index: 2, kind: input, shape index: {}]   ;;  %s2369_s3 = inlined_call_operand.vmem [shape: f32[64,16], index: 3, kind: input, shape index: {}]   ;;  %s2370_s4 = inlined_call_operand.vmem [shape: f32[2,1,32], index: 4, kind: input, shape index: {}]   ;;  %s2371_s5 = inlined_call_operand.vmem [shape: f32[2,32,256], index: 5, kind: input, shape index: {}]   ;;  %s2372_s6 = inlined_call_operand.vmem [shape: f32[2,1,32], index: 6, kind: input, shape index: {}]   ;;  %s2373_s7 = inlined_call_operand.vmem [shape: f32[2,32,128], index: 7, kind: input, shape index: {}]   ;;  %s2374_s8 = inlined_call_operand.vmem [shape: f32[2,64,32], index: 8, kind: input, shape index: {}]   ;;  %s2375_s9 = inlined_call_operand.vmem [shape: f32[1,32], index: 9, kind: input, shape index: {}]   ;;  %s2376_s10 = inlined_call_operand.hbm [shape: f32[16,32], index: 10, kind: output, shape index: {}]  }
   0x1   :  { %16 = vsyncpa [#allocation6], 0 }
   0x2   :  { %17 = vsyncpa [#allocation4], 0  ;;  %s24_s15 = sshll.u32 %s2367_s1, 4  ;;  %s1824_s16 = smov [#allocation2]   ;;  %s25_s15 = int_to_ptr.hbm [resolvable:$true] %s24_s15 }
   0x3   :  { %s26_s17 = sshll.u32 %s1824_s16, 4  ;;  %s37_s20 = sshll.u32 %s2368_s2, 4  ;;  %s27_s17 = int_to_ptr.vmem [resolvable:$true] %s26_s17  ;;  %s38_s20 = int_to_ptr.hbm [resolvable:$true] %s37_s20 }
   0x4   :  { %s1825_s21 = smov 128   ;;  %s1826_s22 = smov 8  }
   0x5   :  { %32 = dma.hbm_to_vmem [thread:$0]  %s25_s15, 256, %s27_s17, [#allocation3], %s1825_s21, %s1825_s21, %s1826_s22  }
   0x6   :  { %s1827_s23 = smov [#allocation5]  }
   0x7   :  { %s39_s24 = sshll.u32 %s1827_s23, 4  ;;  %s40_s24 = int_to_ptr.vmem [resolvable:$true] %s39_s24 }
   0x8   :  { %45 = dma.hbm_to_vmem [thread:$0]  %s38_s20, 256, %s40_s24, [#allocation6], %s1825_s21, %s1825_s21, %s1826_s22  }
   0x9   :  { %1818 = dma.done.wait [#allocation3], 256  }
   0xa   :  { %1819 = vsyncadd [#allocation3], 4294967040 }
   0xb   :  { %1820 = dma.done.wait [#allocation6], 256  }
   0xc   :  { %1821 = vsyncadd [#allocation6], 4294967040  ;;  %v1909_v0 = vld [vmem:[%s2366_s0] sm:$0xff]  ;;  %vm85_vm0 = vcmask 261120   ;;  %v1916_v2 = vld [vmem:[%s2366_s0 + $0x8] sm:$0xff]  ;;  %v1828_v6 = vmov 32.0  }
   0xd   :  { %v83_v1 = vmul.f32 %v1909_v0, %v1909_v0  ;;  %v84_v4 = vmul.f32 %v1916_v2, %v1916_v2  ;;  %1644 = vrcp.f32 %v1828_v6  ;;  %v136_v10 = vld [vmem:[%s2371_s5 + $0x30] sm:$0xff]  ;;  %v137_v11 = vld [vmem:[%s2371_s5 + $0x38] sm:$0xff]  ;;  %v134_v12 = vld [vmem:[%s2371_s5 + $0x20] sm:$0xff]  ;;  %s1829_s24 = smov 64   ;;  %s1830_s25 = smov 96   ;;  %vm218_vm8 = vcmask 64512  }
   0xe   :  { %156 = vmatpush.msra.mxu0 %v136_v10  ;;  %179 = vmatpush.msra.mxu1 %v137_v11  ;;  %v135_v13 = vld [vmem:[%s2371_s5 + $0x28] sm:$0xff]  ;;  %v132_v15 = vld [vmem:[%s2371_s5 + $0x10] sm:$0xff]  ;;  %v133_v16 = vld [vmem:[%s2371_s5 + $0x18] sm:$0xff]  ;;  %s1831_s26 = smov 88   ;;  %s1832_s27 = smov 72   ;;  %vm375_vm9 = vcmask 130048  }
   0xf   :  { %v86_v3 = vsel %vm85_vm0, %v83_v1, 0.0  ;;  %v89_v5 = vsel %vm85_vm0, %v84_v4, 0.0  ;;  %v130_v17 = vld [vmem:[%s2371_s5] sm:$0xff]  ;;  %v131_v18 = vld [vmem:[%s2371_s5 + $0x8] sm:$0xff]  ;;  %v73_v20 = vld [vmem:[#allocation5 + $0x8] sm:$0xff]  ;;  %s1833_s28 = smov 120  }
  0x10   :  { %87 = vadd.xlane.f32.xlu0 %v86_v3  ;;  %157 = vmatpush.msra.mxu0 %v134_v12  ;;  %v72_v25 = vld [vmem:[#allocation5] sm:$0xff]  ;;  %v1639_v37 = vld [vmem:[%s2370_s4] ss:$0 sm:$0xff]  ;;  %v1969_v54 = vld [vmem:[#allocation2 + $0x8] sm:$0xff]  ;;  %s1834_s0 = smov 112   ;;  %s1835_s29 = smov 80  }
  0x11   :  { %180 = vmatpush.msra.mxu1 %v135_v13  ;;  %196 = vrot.lane.b32.xlu1 %v73_v20, %s1829_s24  ;;  %v1973_v58 = vld [vmem:[#allocation2] sm:$0xff]  ;;  %s1836_s30 = smov 104   ;;  %v2018_v20 = vld [vmem:[%s2369_s3 + $0x10] sm:$0xff] }
  0x12   :  { %158 = vmatpush.msra.mxu0 %v132_v15 }
  0x13   :  { %v1645_v7 = vpop.eup %1644  ;;  %181 = vmatpush.msra.mxu1 %v133_v16  ;;  %v2011_v16 = vld [vmem:[%s2369_s3] sm:$0xff] }
  0x14   :  { %v93_v8 = vmul.f32 32.0, %v1645_v7  ;;  %159 = vmatpush.msra.mxu0 %v130_v17  ;;  %vm97_vm1 = vweird.f32 %v1645_v7 }
  0x15   :  { %182 = vmatpush.msra.mxu1 %v131_v18 }
  0x16   :  { %v94_v9 = vsub.f32 1.0, %v93_v8 }
  0x18   :  { %90 = vadd.xlane.f32.xlu0 %v89_v5  ;;  %v95_v14 = vmul.f32 %v1645_v7, %v94_v9 }
  0x19   :  { %194 = vrot.lane.b32.xlu1 %v72_v25, %s1829_s24  ;;  %v2025_v25 = vld [vmem:[%s2369_s3 + $0x20] sm:$0xff] }
  0x1a   :  { %v96_v19 = vadd.f32 %v1645_v7, %v95_v14 }
  0x1c   :  { %v1947_v21 = vsel %vm97_vm1, %v1645_v7, %v96_v19 }
  0x83   :  { %v88_v22 = vpop.xlane.xlu0 %87  ;;  %v1961_v49 = vpop.permute.xlu1 %196 }
  0x84   :  { %v99_v23 = vmul.f32 %v1947_v21, %v88_v22 }
  0x86   :  { %v101_v24 = vadd.f32 1e-06, %v99_v23 }
  0x88   :  { %1646 = vrsqrt.f32 %v101_v24  ;;  %vm109_vm3 = vweird.f32 %v101_v24 }
  0x8b   :  { %v91_v26 = vpop.xlane.xlu0 %90  ;;  %v1965_v52 = vpop.permute.xlu1 %194 }
  0x8c   :  { %v100_v27 = vmul.f32 %v1947_v21, %v91_v26 }
  0x8e   :  { %v1647_v28 = vpop.eup %1646  ;;  %v102_v29 = vadd.f32 1e-06, %v100_v27  ;;  %v2030_v27 = vld [vmem:[%s2369_s3 + $0x18] sm:$0xff] }
  0x8f   :  { %v104_v30 = vmul.f32 %v1647_v28, %v101_v24  ;;  %vm110_vm2 = vweird.f32 %v1647_v28 }
  0x90   :  { %1648 = vrsqrt.f32 %v102_v29  ;;  %vm111_vm4 = vmor %vm109_vm3, %vm110_vm2  ;;  %vm119_vm6 = vweird.f32 %v102_v29 }
  0x91   :  { %v105_v31 = vmul.f32 %v1647_v28, %v104_v30 }
  0x93   :  { %v106_v32 = vmul.f32 0.5, %v105_v31 }
  0x95   :  { %v107_v33 = vsub.f32 1.5, %v106_v32  ;;  %v2038_v32 = vld [vmem:[%s2369_s3 + $0x30] sm:$0xff] }
  0x96   :  { %v1649_v34 = vpop.eup %1648 }
  0x97   :  { %v108_v35 = vmul.f32 %v1647_v28, %v107_v33  ;;  %v114_v36 = vmul.f32 %v1649_v34, %v102_v29  ;;  %vm120_vm5 = vweird.f32 %v1649_v34 }
  0x98   :  { %vm121_vm7 = vmor %vm119_vm6, %vm120_vm5 }
  0x99   :  { %v115_v38 = vmul.f32 %v1649_v34, %v114_v36  ;;  %v112_v39 = vsel %vm111_vm4, %v1647_v28, %v108_v35  ;;  %v2045_v36 = vld [vmem:[%s2369_s3 + $0x28] sm:$0xff] }
  0x9a   :  { %v123_v40 = vmul.f32 %v112_v39, %v1909_v0  ;;  %v2051_v39 = vld [vmem:[%s2369_s3 + $0x8] sm:$0xff] }
  0x9b   :  { %v116_v41 = vmul.f32 0.5, %v115_v38 }
  0x9c   :  { %v128_v42 = vmul.f32 %v1639_v37, %v123_v40 }
  0x9d   :  { %v117_v43 = vsub.f32 1.5, %v116_v41 }
  0x9e   :  { %1504 = vmatmul.msk.f32.vlgmr.msra.gmra.mxu0 %vm85_vm0, %v128_v42  ;;  %1506 = vmatmul.msk.f32.vlgmr.msra.gmra.mxu1 %vm85_vm0, %v128_v42  ;;  %v2057_v42 = vld [vmem:[%s2369_s3 + $0x38] sm:$0xff]  ;;  %s1837_s3 = smov 32  }
  0x9f   :  { %v118_v44 = vmul.f32 %v1649_v34, %v117_v43 }
  0xa1   :  { %v122_v45 = vsel %vm121_vm7, %v1649_v34, %v118_v44 }
  0xa2   :  { %v124_v46 = vmul.f32 %v122_v45, %v1916_v2 }
  0xa4   :  { %v129_v47 = vmul.f32 %v1639_v37, %v124_v46 }
  0xa6   :  { %1505 = vmatmul.msk.f32.gmra.mxu0 %vm85_vm0, %v129_v47  ;;  %1507 = vmatmul.msk.f32.gmra.mxu1 %vm85_vm0, %v129_v47 }
 0x11b   :  { %v161_v48 = vpop.f32.mrf.mxu0  ;;  %v1993_v6 = vpop.f32.mrf.mxu1 }
 0x11c   :  { %v200_v53 = vmul.f32 %v1965_v52, %v161_v48  ;;  %v190_v59 = vmul.f32 %v161_v48, %v1973_v58 }
 0x123   :  { %v164_v50 = vpop.f32.mrf.mxu0  ;;  %v187_v9 = vpop.f32.mrf.mxu1 }
 0x124   :  { %v201_v51 = vmul.f32 %v1961_v49, %v164_v50  ;;  %v191_v55 = vmul.f32 %v164_v50, %v1969_v54  ;;  %v2065_v50 = vpack.i.bf16 %v1993_v6, %v187_v9 }
 0x126   :  { %206 = vrot.lane.b32.xlu2 %v201_v51, %s1829_s24 }
 0x12e   :  { %204 = vrot.lane.b32.xlu2 %v200_v53, %s1829_s24 }
 0x180   :  { %v207_v56 = vpop.permute.xlu2 %206 }
 0x181   :  { %v211_v57 = vadd.f32 %v207_v56, %v191_v55 }
 0x183   :  { %216 = vrot.lane.b32.xlu0 %v211_v57, %s1830_s25 }
 0x188   :  { %v205_v60 = vpop.permute.xlu2 %204 }
 0x189   :  { %v210_v61 = vadd.f32 %v205_v60, %v190_v59 }
 0x18b   :  { %254 = vrot.lane.b32.xlu1 %v210_v61, %s1831_s26  ;;  %214 = vrot.lane.b32.xlu2 %v210_v61, %s1830_s25 }
 0x18c   :  { %334 = vrot.lane.b32.xlu0 %v211_v57, %s1832_s27 }
 0x193   :  { %250 = vrot.lane.b32.xlu2 %v210_v61, %s1833_s28  ;;  %256 = vrot.lane.b32.xlu1 %v211_v57, %s1831_s26 }
 0x194   :  { %289 = vrot.lane.b32.xlu0 %v210_v61, %s1834_s0 }
 0x19b   :  { %252 = vrot.lane.b32.xlu2 %v211_v57, %s1833_s28  ;;  %295 = vrot.lane.b32.xlu1 %v211_v57, %s1835_s29 }
 0x19c   :  { %330 = vrot.lane.b32.xlu0 %v211_v57, %s1836_s30 }
 0x1a3   :  { %332 = vrot.lane.b32.xlu2 %v210_v61, %s1832_s27  ;;  %293 = vrot.lane.b32.xlu1 %v210_v61, %s1835_s29 }
 0x1ab   :  { %291 = vrot.lane.b32.xlu2 %v211_v57, %s1834_s0  ;;  %328 = vrot.lane.b32.xlu1 %v210_v61, %s1836_s30 }
 0x1e5   :  { %v215_v62 = vpop.permute.xlu2 %214 }
 0x1ed   :  { %v251_v63 = vpop.permute.xlu2 %250 }
 0x1f5   :  { %v217_v1 = vpop.permute.xlu0 %216  ;;  %v253_v3 = vpop.permute.xlu2 %252 }
 0x1f6   :  { %1508 = vmatpush.xpose.msk.msra.mxu2 %vm218_vm8, %v217_v1 }
 0x1fa   :  { %1509 = vmatpush.xpose.msk.msra.mxu2 %vm218_vm8, %v215_v62 }
 0x1fd   :  { %v255_v4 = vpop.permute.xlu1 %254  ;;  %1510 = vmatmul.msk.f32.vlgmr.msra.gmra.mxu2 %vm218_vm8, %v210_v61  ;;  %v333_v7 = vpop.permute.xlu2 %332 }
 0x1fe   :  { %v335_v5 = vpop.permute.xlu0 %334 }
 0x1ff   :  { %1520 = vmatpush.xpose.msk.msrb.mxu1 %vm218_vm8, %v335_v5 }
 0x203   :  { %1521 = vmatpush.xpose.msk.msrb.mxu1 %vm218_vm8, %v333_v7 }
 0x205   :  { %v257_v8 = vpop.permute.xlu1 %256  ;;  %1511 = vmatmul.msk.f32.gmra.mxu2 %vm218_vm8, %v211_v57  ;;  %v292_v14 = vpop.permute.xlu2 %291 }
 0x206   :  { %1512 = vmatpush.xpose.msk.msra.mxu3 %vm218_vm8, %v257_v8  ;;  %v290_v12 = vpop.permute.xlu0 %289 }
 0x20a   :  { %1513 = vmatpush.xpose.msk.msra.mxu3 %vm218_vm8, %v255_v4 }
 0x20d   :  { %1514 = vmatmul.msk.f32.vlgmr.msra.gmra.mxu3 %vm218_vm8, %v251_v63  ;;  %v296_v10 = vpop.permute.xlu1 %295 }
 0x20e   :  { %521 = vmatpush.msrb.mxu3 %v187_v9  ;;  %1516 = vmatpush.xpose.msk.msrb.mxu0 %vm218_vm8, %v296_v10  ;;  %v331_v15 = vpop.permute.xlu0 %330 }
 0x210   :  { %522 = vmatpush.msrb.mxu3 %v1993_v6 }
 0x215   :  { %1515 = vmatmul.msk.f32.gmra.mxu3 %vm218_vm8, %v253_v3  ;;  %v294_v11 = vpop.permute.xlu1 %293 }
 0x216   :  { %1517 = vmatpush.xpose.msk.msrb.mxu0 %vm218_vm8, %v294_v11 }
 0x219   :  { %1518 = vmatmul.msk.f32.vlgmr.msrb.gmra.mxu0 %vm218_vm8, %v290_v12 }
 0x21d   :  { %v329_v13 = vpop.permute.xlu1 %328 }
 0x21e   :  { %1522 = vmatmul.msk.f32.vlgmr.msrb.gmra.mxu1 %vm218_vm8, %v329_v13 }
 0x221   :  { %1519 = vmatmul.msk.f32.gmra.mxu0 %vm218_vm8, %v292_v14 }
 0x226   :  { %1523 = vmatmul.msk.f32.gmra.mxu1 %vm218_vm8, %v331_v15 }
 0x280   :  { %v244_v17 = vpop.f32.mrf.mxu2 }
 0x281   :  { %v367_v18 = vadd.f32 %v244_v17, %v2011_v16 }
 0x283   :  { %v376_v19 = vsel %vm375_vm9, %v367_v18, -inf }
 0x284   :  { %377 = vmax.xlane.f32.xlu1 %v376_v19 }
 0x288   :  { %v247_v40 = vpop.f32.mrf.mxu2 }
 0x289   :  { %v368_v43 = vadd.f32 %v247_v40, %v2051_v39 }
 0x28b   :  { %v379_v47 = vsel %vm375_vm9, %v368_v43, -inf }
 0x290   :  { %v283_v22 = vpop.f32.mrf.mxu3 }
 0x291   :  { %v369_v23 = vadd.f32 %v283_v22, %v2018_v20 }
 0x293   :  { %v382_v24 = vsel %vm375_vm9, %v369_v23, -inf }
 0x294   :  { %383 = vmax.xlane.f32.xlu2 %v382_v24 }
 0x296   :  { %v322_v26 = vpop.f32.mrf.mxu0 }
 0x297   :  { %v371_v28 = vadd.f32 %v322_v26, %v2025_v25 }
 0x298   :  { %v286_v29 = vpop.f32.mrf.mxu3 }
 0x299   :  { %v370_v30 = vadd.f32 %v286_v29, %v2030_v27  ;;  %v388_v31 = vsel %vm375_vm9, %v371_v28, -inf }
 0x29a   :  { %389 = vmax.xlane.f32.xlu1 %v388_v31 }
 0x29b   :  { %v361_v33 = vpop.f32.mrf.mxu1  ;;  %v385_v34 = vsel %vm375_vm9, %v370_v30, -inf }
 0x29c   :  { %v373_v35 = vadd.f32 %v361_v33, %v2038_v32  ;;  %386 = vmax.xlane.f32.xlu2 %v385_v34 }
 0x29e   :  { %v325_v37 = vpop.f32.mrf.mxu0  ;;  %v394_v38 = vsel %vm375_vm9, %v373_v35, -inf }
 0x29f   :  { %v372_v41 = vadd.f32 %v325_v37, %v2045_v36  ;;  %395 = vmax.xlane.f32.xlu0 %v394_v38 }
 0x2a1   :  { %v391_v45 = vsel %vm375_vm9, %v372_v41, -inf }
 0x2a3   :  { %v364_v44 = vpop.f32.mrf.mxu1 }
 0x2a4   :  { %v374_v46 = vadd.f32 %v364_v44, %v2057_v42  ;;  %392 = vmax.xlane.f32.xlu2 %v391_v45 }
 0x2a6   :  { %v397_v48 = vsel %vm375_vm9, %v374_v46, -inf }
 0x2a7   :  { %380 = vmax.xlane.f32.xlu0 %v379_v47  ;;  %398 = vmax.xlane.f32.xlu1 %v397_v48 }
 0x2c0   :  { %1610 = vrot.lane.b32.xlu1 %v2065_v50, %s1830_s25 }
 0x2c8   :  { %1620 = vrot.lane.b32.xlu1 %v2065_v50, %s1837_s3 }
 0x2f7   :  { %v378_v51 = vpop.xlane.xlu1 %377 }
 0x2f8   :  { %v400_v57 = vsub.f32 %v367_v18, %v378_v51 }
 0x2fa   :  { %v408_v62 = vmul.f32 1.442695, %v400_v57 }
 0x307   :  { %v384_v55 = vpop.xlane.xlu2 %383 }
 0x308   :  { %v402_v63 = vsub.f32 %v369_v23, %v384_v55 }
 0x30a   :  { %v412_v5 = vmul.f32 1.442695, %v402_v63 }
 0x30d   :  { %v390_v53 = vpop.xlane.xlu1 %389 }
 0x30e   :  { %v404_v56 = vsub.f32 %v371_v28, %v390_v53 }
 0x30f   :  { %v387_v4 = vpop.xlane.xlu2 %386 }
 0x310   :  { %v416_v59 = vmul.f32 1.442695, %v404_v56  ;;  %v403_v10 = vsub.f32 %v370_v30, %v387_v4 }
 0x312   :  { %1650 = vpow2.f32 %v416_v59  ;;  %v396_v60 = vpop.xlane.xlu0 %395  ;;  %v414_v14 = vmul.f32 1.442695, %v403_v10 }
 0x313   :  { %v406_v61 = vsub.f32 %v373_v35, %v396_v60 }
 0x315   :  { %v420_v1 = vmul.f32 1.442695, %v406_v61 }
 0x317   :  { %1652 = vpow2.f32 %v420_v1  ;;  %v393_v17 = vpop.xlane.xlu2 %392 }
 0x318   :  { %v2071_v3 = vpop.eup %1650  ;;  %1654 = vpow2.f32 %v408_v62  ;;  %v405_v19 = vsub.f32 %v372_v41, %v393_v17 }
 0x319   :  { %v436_v6 = vsel %vm375_vm9, %v2071_v3, 0.0  ;;  %1656 = vpow2.f32 %v412_v5 }
 0x31a   :  { %437 = vadd.xlane.f32.xlu0 %v436_v6  ;;  %v381_v7 = vpop.xlane.xlu0 %380  ;;  %v418_v24 = vmul.f32 1.442695, %v405_v19  ;;  %v399_v28 = vpop.xlane.xlu1 %398 }
 0x31b   :  { %v401_v8 = vsub.f32 %v368_v43, %v381_v7  ;;  %v407_v30 = vsub.f32 %v374_v46, %v399_v28 }
 0x31d   :  { %v1653_v9 = vpop.eup %1652  ;;  %v410_v11 = vmul.f32 1.442695, %v401_v8  ;;  %v422_v33 = vmul.f32 1.442695, %v407_v30 }
 0x31e   :  { %v1655_v12 = vpop.eup %1654  ;;  %v442_v13 = vsel %vm375_vm9, %v1653_v9, 0.0 }
 0x31f   :  { %443 = vadd.xlane.f32.xlu2 %v442_v13  ;;  %1658 = vpow2.f32 %v410_v11  ;;  %v424_v15 = vsel %vm375_vm9, %v1655_v12, 0.0  ;;  %v1657_v18 = vpop.eup %1656 }
 0x320   :  { %1660 = vpow2.f32 %v414_v14  ;;  %v430_v23 = vsel %vm375_vm9, %v1657_v18, 0.0 }
 0x321   :  { %1662 = vpow2.f32 %v418_v24 }
 0x322   :  { %425 = vadd.xlane.f32.xlu0 %v424_v15  ;;  %1664 = vpow2.f32 %v422_v33 }
 0x325   :  { %v1659_v22 = vpop.eup %1658 }
 0x326   :  { %v427_v26 = vsel %vm375_vm9, %v1659_v22, 0.0  ;;  %v1661_v29 = vpop.eup %1660 }
 0x327   :  { %431 = vadd.xlane.f32.xlu2 %v430_v23  ;;  %v433_v31 = vsel %vm375_vm9, %v1661_v29, 0.0  ;;  %v1663_v35 = vpop.eup %1662 }
 0x328   :  { %v439_v40 = vsel %vm375_vm9, %v1663_v35, 0.0  ;;  %v1665_v43 = vpop.eup %1664 }
 0x329   :  { %v445_v46 = vsel %vm375_vm9, %v1665_v43, 0.0 }
 0x32a   :  { %428 = vadd.xlane.f32.xlu0 %v427_v26 }
 0x32f   :  { %434 = vadd.xlane.f32.xlu2 %v433_v31 }
 0x332   :  { %v1611_v34 = vpop.permute.xlu1 %1610 }
 0x333   :  { %v1612_v37 = vunpack.i.l.bf16 %v1611_v34  ;;  %v1613_v38 = vunpack.i.h.bf16 %v1611_v34 }
 0x335   :  { %492 = vmatpush.msrb.mxu2 %v1612_v37 }
 0x337   :  { %493 = vmatpush.msrb.mxu2 %v1613_v38  ;;  %440 = vadd.xlane.f32.xlu2 %v439_v40 }
 0x33a   :  { %v1621_v41 = vpop.permute.xlu1 %1620 }
 0x33b   :  { %v1622_v44 = vunpack.i.l.bf16 %v1621_v41  ;;  %v1623_v45 = vunpack.i.h.bf16 %v1621_v41 }
 0x33d   :  { %593 = vmatpush.msra.mxu1 %v1622_v44  ;;  %v649_v44 = vld [vmem:[%s2373_s7 + $0x18] sm:$0xff] }
 0x33e   :  { %1615 = vrot.lane.b32.xlu0 %v2065_v50, %s1829_s24  ;;  %668 = vmatpush.msra.mxu2 %v649_v44 }
 0x33f   :  { %594 = vmatpush.msra.mxu1 %v1623_v45  ;;  %446 = vadd.xlane.f32.xlu2 %v445_v46  ;;  %v648_v45 = vld [vmem:[%s2373_s7 + $0x10] sm:$0xff]  ;;  %v646_v46 = vld [vmem:[%s2373_s7] sm:$0xff] }
 0x340   :  { %669 = vmatpush.msra.mxu2 %v648_v45 }
 0x38d   :  { %v438_v47 = vpop.xlane.xlu0 %437 }
 0x392   :  { %v444_v48 = vpop.xlane.xlu2 %443 }
 0x393   :  { %1666 = vrcp.f32 %v444_v48 }
 0x395   :  { %v426_v51 = vpop.xlane.xlu0 %425 }
 0x396   :  { %1668 = vrcp.f32 %v426_v51 }
 0x399   :  { %v1667_v53 = vpop.eup %1666 }
 0x39a   :  { %v462_v55 = vmul.f32 %v1667_v53, %v1653_v9  ;;  %v432_v56 = vpop.xlane.xlu2 %431 }
 0x39b   :  { %1670 = vrcp.f32 %v432_v56 }
 0x39c   :  { %v1669_v57 = vpop.eup %1668  ;;  %1530 = vmatmul.msk.f32.vlgmr.msra.gmra.mxu1 %vm375_vm9, %v462_v55 }
 0x39d   :  { %v429_v59 = vpop.xlane.xlu0 %428  ;;  %v456_v60 = vmul.f32 %v1669_v57, %v1655_v12 }
 0x39e   :  { %1672 = vrcp.f32 %v429_v59 }
 0x39f   :  { %1526 = vmatmul.msk.f32.vlgmr.msrb.gmra.mxu3 %vm375_vm9, %v456_v60 }
 0x3a1   :  { %v1671_v50 = vpop.eup %1670 }
 0x3a2   :  { %v435_v61 = vpop.xlane.xlu2 %434  ;;  %v458_v62 = vmul.f32 %v1671_v50, %v1657_v18 }
 0x3a3   :  { %1674 = vrcp.f32 %v435_v61 }
 0x3a4   :  { %v1673_v63 = vpop.eup %1672  ;;  %1524 = vmatmul.msk.f32.vlgmr.msrb.gmra.mxu2 %vm375_vm9, %v458_v62  ;;  %1676 = vrcp.f32 %v438_v47 }
 0x3a5   :  { %v457_v1 = vmul.f32 %v1673_v63, %v1659_v22 }
 0x3a7   :  { %1527 = vmatmul.msk.f32.gmra.mxu3 %vm375_vm9, %v457_v1 }
 0x3a9   :  { %v1675_v4 = vpop.eup %1674 }
 0x3aa   :  { %v441_v5 = vpop.xlane.xlu2 %440  ;;  %v459_v6 = vmul.f32 %v1675_v4, %v1661_v29  ;;  %v1677_v8 = vpop.eup %1676  ;;  %v1640_v4 = vld [vmem:[%s2372_s6] ss:$0 sm:$0xff] }
 0x3ab   :  { %1678 = vrcp.f32 %v441_v5  ;;  %v460_v12 = vmul.f32 %v1677_v8, %v2071_v3 }
 0x3ac   :  { %1525 = vmatmul.msk.f32.gmra.mxu2 %vm375_vm9, %v459_v6 }
 0x3b0   :  { %v1616_v7 = vpop.permute.xlu0 %1615 }
 0x3b1   :  { %v1617_v9 = vunpack.i.l.bf16 %v1616_v7  ;;  %v1618_v11 = vunpack.i.h.bf16 %v1616_v7  ;;  %v1679_v13 = vpop.eup %1678 }
 0x3b2   :  { %v447_v10 = vpop.xlane.xlu2 %446  ;;  %v461_v17 = vmul.f32 %v1679_v13, %v1663_v35 }
 0x3b3   :  { %1680 = vrcp.f32 %v447_v10  ;;  %556 = vmatpush.msra.mxu0 %v1617_v9 }
 0x3b5   :  { %557 = vmatpush.msra.mxu0 %v1618_v11 }
 0x3b6   :  { %1528 = vmatmul.msk.f32.vlgmr.msra.gmra.mxu0 %vm375_vm9, %v460_v12 }
 0x3b9   :  { %v1681_v14 = vpop.eup %1680 }
 0x3ba   :  { %v463_v15 = vmul.f32 %v1681_v14, %v1665_v43 }
 0x3bc   :  { %1531 = vmatmul.msk.f32.gmra.mxu1 %vm375_vm9, %v463_v15 }
 0x3be   :  { %1529 = vmatmul.msk.f32.gmra.mxu0 %vm375_vm9, %v461_v17 }
 0x419   :  { %v596_v26 = vpop.f32.mrf.mxu1 }
 0x422   :  { %v524_v19 = vpop.f32.mrf.mxu3 }
 0x427   :  { %v495_v18 = vpop.f32.mrf.mxu2 }
 0x428   :  { %v525_v22 = vadd.f32 %v524_v19, %v495_v18  ;;  %v736_v19 = vld [vmem:[%s2374_s8 + $0x38] sm:$0xff] }
 0x429   :  { %752 = vmatpush.msra.mxu3 %v736_v19  ;;  %v1541_v19 = vld [vmem:[%s2371_s5 + $0x50] sm:$0xff] }
 0x42a   :  { %v527_v30 = vpop.f32.mrf.mxu3 }
 0x42f   :  { %v498_v29 = vpop.f32.mrf.mxu2 }
 0x430   :  { %v528_v31 = vadd.f32 %v527_v30, %v498_v29  ;;  %v731_v30 = vld [vmem:[%s2374_s8 + $0x10] sm:$0xff] }
 0x433   :  { %v559_v23 = vpop.f32.mrf.mxu0 }
 0x434   :  { %v565_v24 = vadd.f32 %v559_v23, %v525_v22  ;;  %v735_v22 = vld [vmem:[%s2374_s8 + $0x30] sm:$0xff]  ;;  %v734_v23 = vld [vmem:[%s2374_s8 + $0x28] sm:$0xff] }
 0x435   :  { %753 = vmatpush.msra.mxu3 %v735_v22  ;;  %v1542_v22 = vld [vmem:[%s2371_s5 + $0x58] sm:$0xff] }
 0x436   :  { %v602_v28 = vadd.f32 %v596_v26, %v565_v24  ;;  %v733_v24 = vld [vmem:[%s2374_s8 + $0x20] sm:$0xff] }
 0x437   :  { %754 = vmatpush.msra.mxu3 %v734_v23  ;;  %v1539_v23 = vld [vmem:[%s2371_s5 + $0x40] sm:$0xff] }
 0x438   :  { %v2094_v3 = vadd.f32 %v602_v28, %v1909_v0  ;;  %v732_v28 = vld [vmem:[%s2374_s8 + $0x18] sm:$0xff] }
 0x439   :  { %v599_v38 = vpop.f32.mrf.mxu1  ;;  %755 = vmatpush.msra.mxu3 %v733_v24  ;;  %v1540_v24 = vld [vmem:[%s2371_s5 + $0x48] sm:$0xff] }
 0x43a   :  { %v607_v33 = vmul.f32 %v2094_v3, %v2094_v3 }
 0x43b   :  { %v562_v34 = vpop.f32.mrf.mxu0  ;;  %756 = vmatpush.msra.mxu3 %v732_v28 }
 0x43c   :  { %v566_v35 = vadd.f32 %v562_v34, %v528_v31  ;;  %v609_v37 = vsel %vm85_vm0, %v607_v33, 0.0  ;;  %v730_v31 = vld [vmem:[%s2374_s8 + $0x8] sm:$0xff] }
 0x43d   :  { %610 = vadd.xlane.f32.xlu1 %v609_v37  ;;  %757 = vmatpush.msra.mxu3 %v731_v30 }
 0x43e   :  { %v603_v40 = vadd.f32 %v599_v38, %v566_v35  ;;  %v729_v35 = vld [vmem:[%s2374_s8] sm:$0xff] }
 0x43f   :  { %758 = vmatpush.msra.mxu3 %v730_v31 }
 0x440   :  { %v2100_v41 = vadd.f32 %v603_v40, %v1916_v2  ;;  %v647_v2 = vld [vmem:[%s2373_s7 + $0x8] sm:$0xff] }
 0x441   :  { %670 = vmatpush.msra.mxu2 %v647_v2  ;;  %759 = vmatpush.msra.mxu3 %v729_v35 }
 0x442   :  { %v608_v43 = vmul.f32 %v2100_v41, %v2100_v41 }
 0x443   :  { %671 = vmatpush.msra.mxu2 %v646_v46 }
 0x444   :  { %v612_v0 = vsel %vm85_vm0, %v608_v43, 0.0 }
 0x445   :  { %613 = vadd.xlane.f32.xlu2 %v612_v0 }
 0x4b0   :  { %v611_v47 = vpop.xlane.xlu1 %610 }
 0x4b1   :  { %v615_v48 = vmul.f32 %v611_v47, %v1947_v21 }
 0x4b3   :  { %v617_v51 = vadd.f32 1e-06, %v615_v48 }
 0x4b5   :  { %1682 = vrsqrt.f32 %v617_v51  ;;  %vm625_vm11 = vweird.f32 %v617_v51 }
 0x4b8   :  { %v614_v53 = vpop.xlane.xlu2 %613 }
 0x4b9   :  { %v616_v55 = vmul.f32 %v614_v53, %v1947_v21 }
 0x4bb   :  { %v1683_v56 = vpop.eup %1682  ;;  %v618_v57 = vadd.f32 1e-06, %v616_v55 }
 0x4bc   :  { %v620_v59 = vmul.f32 %v1683_v56, %v617_v51  ;;  %vm626_vm10 = vweird.f32 %v1683_v56 }
 0x4bd   :  { %1684 = vrsqrt.f32 %v618_v57  ;;  %vm627_vm12 = vmor %vm625_vm11, %vm626_vm10  ;;  %vm635_vm14 = vweird.f32 %v618_v57  ;;  %vm737_vm10 = vcmask 523264  }
 0x4be   :  { %v621_v60 = vmul.f32 %v1683_v56, %v620_v59 }
 0x4c0   :  { %v622_v50 = vmul.f32 0.5, %v621_v60 }
 0x4c2   :  { %v623_v61 = vsub.f32 1.5, %v622_v50 }
 0x4c3   :  { %v1685_v62 = vpop.eup %1684 }
 0x4c4   :  { %v624_v63 = vmul.f32 %v1683_v56, %v623_v61  ;;  %v630_v1 = vmul.f32 %v1685_v62, %v618_v57  ;;  %vm636_vm13 = vweird.f32 %v1685_v62 }
 0x4c5   :  { %vm637_vm15 = vmor %vm635_vm14, %vm636_vm13 }
 0x4c6   :  { %v628_v5 = vsel %vm627_vm12, %v1683_v56, %v624_v63  ;;  %v631_v6 = vmul.f32 %v1685_v62, %v630_v1 }
 0x4c7   :  { %v639_v7 = vmul.f32 %v628_v5, %v2094_v3 }
 0x4c8   :  { %v632_v8 = vmul.f32 0.5, %v631_v6 }
 0x4c9   :  { %v644_v9 = vmul.f32 %v1640_v4, %v639_v7 }
 0x4ca   :  { %v633_v10 = vsub.f32 1.5, %v632_v8 }
 0x4cb   :  { %1532 = vmatmul.msk.f32.vlgmr.msra.gmra.mxu2 %vm85_vm0, %v644_v9 }
 0x4cc   :  { %v634_v11 = vmul.f32 %v1685_v62, %v633_v10 }
 0x4ce   :  { %v638_v12 = vsel %vm637_vm15, %v1685_v62, %v634_v11 }
 0x4cf   :  { %v640_v13 = vmul.f32 %v638_v12, %v2100_v41 }
 0x4d1   :  { %v645_v14 = vmul.f32 %v1640_v4, %v640_v13 }
 0x4d3   :  { %1533 = vmatmul.msk.f32.gmra.mxu2 %vm85_vm0, %v645_v14 }
 0x54e   :  { %v673_v15 = vpop.f32.mrf.mxu2 }
 0x54f   :  { %721 = vrot.lane.b32.xlu0 %v673_v15, %s1829_s24  ;;  %v1534_v18 = vmul.f32 -1.442695, %v673_v15 }
 0x551   :  { %1686 = vpow2.f32 %v1534_v18  ;;  %v1544_v18 = vld [vmem:[%s2371_s5 + $0x68] sm:$0xff] }
 0x556   :  { %v676_v17 = vpop.f32.mrf.mxu2 }
 0x557   :  { %723 = vrot.lane.b32.xlu2 %v676_v17, %s1829_s24  ;;  %v1535_v26 = vmul.f32 -1.442695, %v676_v17  ;;  %v1687_v29 = vpop.eup %1686 }
 0x558   :  { %v685_v33 = vadd.f32 1.0, %v1687_v29 }
 0x559   :  { %1688 = vpow2.f32 %v1535_v26 }
 0x55a   :  { %1690 = vrcp.f32 %v685_v33  ;;  %v698_v47 = vand.u32 2147483648, %v685_v33  ;;  %vm692_vm2 = vweird.f32 %v685_v33  ;;  %v696_v48 = vand.u32 2147483647, %v685_v33 }
 0x55c   :  { %v699_v55 = vor.u32 1.1754944e-38, %v698_v47  ;;  %vm697_vm4 = vcmp.eq.f32.partialorder %v696_v48, 8.507059e+37 }
 0x55f   :  { %v1689_v34 = vpop.eup %1688 }
 0x560   :  { %v686_v37 = vadd.f32 1.0, %v1689_v34  ;;  %v1691_v38 = vpop.eup %1690 }
 0x561   :  { %v688_v40 = vmul.f32 %v1691_v38, %v685_v33  ;;  %vm693_vm1 = vweird.f32 %v1691_v38 }
 0x562   :  { %1692 = vrcp.f32 %v686_v37  ;;  %vm694_vm3 = vmor %vm692_vm2, %vm693_vm1  ;;  %v713_v59 = vand.u32 2147483648, %v686_v37  ;;  %vm707_vm6 = vweird.f32 %v686_v37  ;;  %v711_v60 = vand.u32 2147483647, %v686_v37 }
 0x563   :  { %v689_v43 = vsub.f32 1.0, %v688_v40 }
 0x564   :  { %v714_v1 = vor.u32 1.1754944e-38, %v713_v59  ;;  %vm712_vm11 = vcmp.eq.f32.partialorder %v711_v60, 8.507059e+37 }
 0x565   :  { %v690_v45 = vmul.f32 %v1691_v38, %v689_v43 }
 0x567   :  { %v691_v46 = vadd.f32 %v1691_v38, %v690_v45  ;;  %v1641_v45 = vld [vmem:[%s2370_s4 + $0x1] ss:$0 sm:$0xff] }
 0x568   :  { %v1693_v0 = vpop.eup %1692 }
 0x569   :  { %v703_v44 = vmul.f32 %v1693_v0, %v686_v37  ;;  %v695_v53 = vsel %vm694_vm3, %v1691_v38, %v691_v46  ;;  %vm708_vm5 = vweird.f32 %v1693_v0 }
 0x56a   :  { %v700_v56 = vsel %vm697_vm4, %v699_v55, %v695_v53  ;;  %vm709_vm7 = vmor %vm707_vm6, %vm708_vm5 }
 0x56b   :  { %v704_v2 = vsub.f32 1.0, %v703_v44  ;;  %v717_v50 = vmul.f32 %v700_v56, %v673_v15 }
 0x56d   :  { %v705_v51 = vmul.f32 %v1693_v0, %v704_v2 }
 0x56f   :  { %v706_v57 = vadd.f32 %v1693_v0, %v705_v51 }
 0x571   :  { %v710_v62 = vsel %vm709_vm7, %v1693_v0, %v706_v57 }
 0x572   :  { %v715_v4 = vsel %vm712_vm11, %v714_v1, %v710_v62 }
 0x573   :  { %v718_v6 = vmul.f32 %v715_v4, %v676_v17  ;;  %v1546_v17 = vld [vmem:[%s2371_s5 + $0x78] sm:$0xff] }
 0x574   :  { %860 = vmatpush.msrb.mxu1 %v1546_v17 }
 0x576   :  { %861 = vmatpush.msrb.mxu1 %v1544_v18 }
 0x578   :  { %862 = vmatpush.msrb.mxu1 %v1542_v22 }
 0x57a   :  { %863 = vmatpush.msrb.mxu1 %v1540_v24 }
 0x5b1   :  { %v724_v5 = vpop.permute.xlu2 %723 }
 0x5b2   :  { %v728_v7 = vmul.f32 %v724_v5, %v718_v6 }
 0x5c1   :  { %v722_v61 = vpop.permute.xlu0 %721 }
 0x5c2   :  { %v727_v63 = vmul.f32 %v722_v61, %v717_v50 }
 0x5c4   :  { %1536 = vmatmul.msk.f32.vlgmr.msra.gmra.mxu3 %vm737_vm10, %v727_v63 }
 0x5cc   :  { %1537 = vmatmul.msk.f32.gmra.mxu3 %vm737_vm10, %v728_v7 }
 0x647   :  { %v761_v8 = vpop.f32.mrf.mxu3 }
 0x648   :  { %v2155_v9 = vadd.f32 %v761_v8, %v2094_v3  ;;  %v1545_v3 = vld [vmem:[%s2371_s5 + $0x70] sm:$0xff] }
 0x649   :  { %837 = vmatpush.msrb.mxu0 %v1545_v3 }
 0x64a   :  { %v771_v10 = vmul.f32 %v2155_v9, %v2155_v9 }
 0x64c   :  { %v773_v11 = vsel %vm85_vm0, %v771_v10, 0.0 }
 0x64d   :  { %774 = vadd.xlane.f32.xlu0 %v773_v11 }
 0x64f   :  { %v764_v12 = vpop.f32.mrf.mxu3 }
 0x650   :  { %v2161_v13 = vadd.f32 %v764_v12, %v2100_v41  ;;  %v1543_v41 = vld [vmem:[%s2371_s5 + $0x60] sm:$0xff] }
 0x651   :  { %838 = vmatpush.msrb.mxu0 %v1543_v41 }
 0x652   :  { %v772_v14 = vmul.f32 %v2161_v13, %v2161_v13 }
 0x653   :  { %839 = vmatpush.msrb.mxu0 %v1541_v19 }
 0x654   :  { %v776_v15 = vsel %vm85_vm0, %v772_v14, 0.0 }
 0x655   :  { %777 = vadd.xlane.f32.xlu2 %v776_v15  ;;  %840 = vmatpush.msrb.mxu0 %v1539_v23 }
 0x6c0   :  { %v775_v26 = vpop.xlane.xlu0 %774 }
 0x6c1   :  { %v779_v28 = vmul.f32 %v775_v26, %v1947_v21 }
 0x6c3   :  { %v781_v29 = vadd.f32 1e-06, %v779_v28 }
 0x6c5   :  { %1694 = vrsqrt.f32 %v781_v29  ;;  %vm789_vm13 = vweird.f32 %v781_v29 }
 0x6c8   :  { %v778_v30 = vpop.xlane.xlu2 %777 }
 0x6c9   :  { %v780_v31 = vmul.f32 %v778_v30, %v1947_v21 }
 0x6cb   :  { %v1695_v33 = vpop.eup %1694  ;;  %v782_v34 = vadd.f32 1e-06, %v780_v31 }
 0x6cc   :  { %v784_v35 = vmul.f32 %v1695_v33, %v781_v29  ;;  %vm790_vm12 = vweird.f32 %v1695_v33 }
 0x6cd   :  { %1696 = vrsqrt.f32 %v782_v34  ;;  %vm791_vm14 = vmor %vm789_vm13, %vm790_vm12  ;;  %vm799_vm1 = vweird.f32 %v782_v34 }
 0x6ce   :  { %v785_v37 = vmul.f32 %v1695_v33, %v784_v35 }
 0x6d0   :  { %v786_v38 = vmul.f32 0.5, %v785_v37 }
 0x6d2   :  { %v787_v40 = vsub.f32 1.5, %v786_v38 }
 0x6d3   :  { %v1697_v43 = vpop.eup %1696 }
 0x6d4   :  { %v788_v0 = vmul.f32 %v1695_v33, %v787_v40  ;;  %v794_v44 = vmul.f32 %v1697_v43, %v782_v34  ;;  %vm800_vm15 = vweird.f32 %v1697_v43 }
 0x6d5   :  { %vm801_vm2 = vmor %vm799_vm1, %vm800_vm15 }
 0x6d6   :  { %v792_v2 = vsel %vm791_vm14, %v1695_v33, %v788_v0  ;;  %v795_v46 = vmul.f32 %v1697_v43, %v794_v44 }
 0x6d7   :  { %v803_v47 = vmul.f32 %v792_v2, %v2155_v9 }
 0x6d8   :  { %v796_v48 = vmul.f32 0.5, %v795_v46 }
 0x6d9   :  { %v808_v51 = vmul.f32 %v1641_v45, %v803_v47 }
 0x6da   :  { %v797_v53 = vsub.f32 1.5, %v796_v48 }
 0x6db   :  { %1547 = vmatmul.msk.f32.vlgmr.msrb.gmra.mxu0 %vm85_vm0, %v808_v51  ;;  %1549 = vmatmul.msk.f32.vlgmr.msrb.gmra.mxu1 %vm85_vm0, %v808_v51 }
 0x6dc   :  { %v798_v55 = vmul.f32 %v1697_v43, %v797_v53 }
 0x6de   :  { %v802_v56 = vsel %vm801_vm2, %v1697_v43, %v798_v55 }
 0x6df   :  { %v804_v57 = vmul.f32 %v802_v56, %v2161_v13 }
 0x6e1   :  { %v809_v59 = vmul.f32 %v1641_v45, %v804_v57 }
 0x6e3   :  { %1548 = vmatmul.msk.f32.gmra.mxu0 %vm85_vm0, %v809_v59  ;;  %1550 = vmatmul.msk.f32.gmra.mxu1 %vm85_vm0, %v809_v59 }
 0x758   :  { %v842_v60 = vpop.f32.mrf.mxu0  ;;  %v865_v8 = vpop.f32.mrf.mxu1 }
 0x759   :  { %v873_v50 = vmul.f32 %v842_v60, %v1965_v52  ;;  %v871_v63 = vmul.f32 %v842_v60, %v1973_v58 }
 0x75b   :  { %877 = vrot.lane.b32.xlu0 %v873_v50, %s1829_s24 }
 0x760   :  { %v845_v61 = vpop.f32.mrf.mxu0  ;;  %v868_v14 = vpop.f32.mrf.mxu1 }
 0x761   :  { %v874_v62 = vmul.f32 %v845_v61, %v1961_v49  ;;  %v872_v5 = vmul.f32 %v845_v61, %v1969_v54 }
 0x763   :  { %879 = vrot.lane.b32.xlu1 %v874_v62, %s1829_s24 }
 0x7cd   :  { %v878_v1 = vpop.permute.xlu0 %877 }
 0x7ce   :  { %v883_v4 = vadd.f32 %v878_v1, %v871_v63 }
 0x7d0   :  { %887 = vrot.lane.b32.xlu0 %v883_v4, %s1830_s25  ;;  %926 = vrot.lane.b32.xlu2 %v883_v4, %s1831_s26 }
 0x7d1   :  { %922 = vrot.lane.b32.xlu1 %v883_v4, %s1833_s28 }
 0x7d5   :  { %v880_v52 = vpop.permute.xlu1 %879 }
 0x7d6   :  { %v884_v6 = vadd.f32 %v880_v52, %v872_v5 }
 0x7d8   :  { %961 = vrot.lane.b32.xlu2 %v883_v4, %s1834_s0  ;;  %967 = vrot.lane.b32.xlu0 %v884_v6, %s1835_s29 }
 0x7d9   :  { %889 = vrot.lane.b32.xlu1 %v884_v6, %s1830_s25 }
 0x7e0   :  { %1002 = vrot.lane.b32.xlu2 %v884_v6, %s1836_s30  ;;  %1006 = vrot.lane.b32.xlu0 %v884_v6, %s1832_s27 }
 0x7e1   :  { %928 = vrot.lane.b32.xlu1 %v884_v6, %s1831_s26 }
 0x7e8   :  { %1004 = vrot.lane.b32.xlu0 %v883_v4, %s1832_s27 }
 0x7e9   :  { %965 = vrot.lane.b32.xlu1 %v883_v4, %s1835_s29 }
 0x7f0   :  { %963 = vrot.lane.b32.xlu0 %v884_v6, %s1834_s0 }
 0x7f1   :  { %924 = vrot.lane.b32.xlu1 %v884_v6, %s1833_s28 }
 0x7f9   :  { %1000 = vrot.lane.b32.xlu1 %v883_v4, %s1836_s30 }
 0x82a   :  { %v927_v12 = vpop.permute.xlu2 %926 }
 0x832   :  { %v962_v17 = vpop.permute.xlu2 %961 }
 0x83a   :  { %v1003_v22 = vpop.permute.xlu2 %1002 }
 0x842   :  { %v888_v49 = vpop.permute.xlu0 %887 }
 0x843   :  { %v923_v54 = vpop.permute.xlu1 %922 }
 0x84a   :  { %v968_v58 = vpop.permute.xlu0 %967 }
 0x84b   :  { %v890_v7 = vpop.permute.xlu1 %889  ;;  %1559 = vmatpush.xpose.msk.msra.mxu0 %vm218_vm8, %v968_v58 }
 0x84c   :  { %1551 = vmatpush.xpose.msk.msrb.mxu2 %vm218_vm8, %v890_v7 }
 0x850   :  { %1552 = vmatpush.xpose.msk.msrb.mxu2 %vm218_vm8, %v888_v49 }
 0x852   :  { %v1007_v10 = vpop.permute.xlu0 %1006 }
 0x853   :  { %1553 = vmatmul.msk.f32.vlgmr.msrb.gmra.mxu2 %vm218_vm8, %v883_v4  ;;  %v929_v11 = vpop.permute.xlu1 %928  ;;  %1563 = vmatpush.xpose.msk.msra.mxu1 %vm218_vm8, %v1007_v10 }
 0x854   :  { %1555 = vmatpush.xpose.msk.msrb.mxu3 %vm218_vm8, %v929_v11 }
 0x858   :  { %1556 = vmatpush.xpose.msk.msrb.mxu3 %vm218_vm8, %v927_v12 }
 0x85a   :  { %v1005_v15 = vpop.permute.xlu0 %1004 }
 0x85b   :  { %1554 = vmatmul.msk.f32.gmra.mxu2 %vm218_vm8, %v884_v6  ;;  %v966_v3 = vpop.permute.xlu1 %965  ;;  %1557 = vmatmul.msk.f32.vlgmr.msrb.gmra.mxu3 %vm218_vm8, %v923_v54 }
 0x85c   :  { %1192 = vmatpush.msra.mxu3 %v868_v14  ;;  %1560 = vmatpush.xpose.msk.msra.mxu0 %vm218_vm8, %v966_v3 }
 0x85d   :  { %1564 = vmatpush.xpose.msk.msra.mxu1 %vm218_vm8, %v1005_v15 }
 0x85e   :  { %1193 = vmatpush.msra.mxu3 %v865_v8 }
 0x85f   :  { %1561 = vmatmul.msk.f32.vlgmr.msra.gmra.mxu0 %vm218_vm8, %v962_v17 }
 0x862   :  { %v964_v18 = vpop.permute.xlu0 %963 }
 0x863   :  { %v925_v41 = vpop.permute.xlu1 %924 }
 0x864   :  { %1558 = vmatmul.msk.f32.gmra.mxu3 %vm218_vm8, %v925_v41 }
 0x867   :  { %1562 = vmatmul.msk.f32.gmra.mxu0 %vm218_vm8, %v964_v18 }
 0x86b   :  { %v1001_v19 = vpop.permute.xlu1 %1000 }
 0x86c   :  { %1565 = vmatmul.msk.f32.vlgmr.msra.gmra.mxu1 %vm218_vm8, %v1001_v19 }
 0x874   :  { %1566 = vmatmul.msk.f32.gmra.mxu1 %vm218_vm8, %v1003_v22 }
 0x8d6   :  { %v916_v23 = vpop.f32.mrf.mxu2 }
 0x8d7   :  { %v1039_v24 = vadd.f32 %v916_v23, %v2011_v16 }
 0x8d9   :  { %v1047_v26 = vsel %vm375_vm9, %v1039_v24, -inf }
 0x8da   :  { %1048 = vmax.xlane.f32.xlu1 %v1047_v26 }
 0x8dc   :  { %v994_v28 = vpop.f32.mrf.mxu0 }
 0x8dd   :  { %v1043_v29 = vadd.f32 %v994_v28, %v2025_v25 }
 0x8de   :  { %v955_v30 = vpop.f32.mrf.mxu3  ;;  %v919_v44 = vpop.f32.mrf.mxu2 }
 0x8df   :  { %v1059_v31 = vsel %vm375_vm9, %v1043_v29, -inf  ;;  %v1041_v33 = vadd.f32 %v955_v30, %v2018_v20 }
 0x8e0   :  { %1060 = vmax.xlane.f32.xlu0 %v1059_v31 }
 0x8e1   :  { %v1053_v37 = vsel %vm375_vm9, %v1041_v33, -inf }
 0x8e4   :  { %v997_v34 = vpop.f32.mrf.mxu0 }
 0x8e5   :  { %v1044_v35 = vadd.f32 %v997_v34, %v2045_v36  ;;  %v1040_v36 = vadd.f32 %v919_v44, %v2051_v39 }
 0x8e7   :  { %v1062_v38 = vsel %vm375_vm9, %v1044_v35, -inf  ;;  %v958_v16 = vpop.f32.mrf.mxu3  ;;  %v1050_v46 = vsel %vm375_vm9, %v1040_v36, -inf }
 0x8e8   :  { %1054 = vmax.xlane.f32.xlu0 %v1053_v37  ;;  %1063 = vmax.xlane.f32.xlu1 %v1062_v38  ;;  %v1042_v25 = vadd.f32 %v958_v16, %v2030_v27  ;;  %v1624_v27 = vpack.i.bf16 %v865_v8, %v868_v14 }
 0x8e9   :  { %v1033_v40 = vpop.f32.mrf.mxu1 }
 0x8ea   :  { %v1045_v43 = vadd.f32 %v1033_v40, %v2038_v32  ;;  %v1056_v20 = vsel %vm375_vm9, %v1042_v25, -inf }
 0x8ec   :  { %v1065_v0 = vsel %vm375_vm9, %v1045_v43, -inf }
 0x8ed   :  { %1066 = vmax.xlane.f32.xlu2 %v1065_v0 }
 0x8f0   :  { %1057 = vmax.xlane.f32.xlu1 %v1056_v20 }
 0x8f1   :  { %v1036_v45 = vpop.f32.mrf.mxu1 }
 0x8f2   :  { %v2251_v2 = vadd.f32 %v1036_v45, %v2057_v42 }
 0x8f4   :  { %v1068_v32 = vsel %vm375_vm9, %v2251_v2, -inf }
 0x8f5   :  { %1051 = vmax.xlane.f32.xlu2 %v1050_v46  ;;  %1069 = vmax.xlane.f32.xlu0 %v1068_v32 }
 0x909   :  { %1625 = vrot.lane.b32.xlu0 %v1624_v27, %s1830_s25  ;;  %s1838_s25 = smov [#allocation7]  }
 0x90a   :  { %s1488_s26 = sshll.u32 %s1838_s25, 4  ;;  %s1489_s26 = int_to_ptr.vmem [resolvable:$true] %s1488_s26 }
 0x94d   :  { %v1049_v47 = vpop.xlane.xlu1 %1048 }
 0x94e   :  { %v1071_v53 = vsub.f32 %v1039_v24, %v1049_v47 }
 0x950   :  { %v1079_v55 = vmul.f32 1.442695, %v1071_v53 }
 0x953   :  { %v1061_v48 = vpop.xlane.xlu0 %1060 }
 0x954   :  { %v1075_v51 = vsub.f32 %v1043_v29, %v1061_v48 }
 0x956   :  { %v1087_v39 = vmul.f32 1.442695, %v1075_v51 }
 0x958   :  { %1698 = vpow2.f32 %v1087_v39 }
 0x959   :  { %1700 = vpow2.f32 %v1079_v55 }
 0x95b   :  { %v1064_v56 = vpop.xlane.xlu1 %1063  ;;  %v1055_v50 = vpop.xlane.xlu0 %1054 }
 0x95c   :  { %v1076_v42 = vsub.f32 %v1044_v35, %v1064_v56  ;;  %v1073_v63 = vsub.f32 %v1041_v33, %v1055_v50 }
 0x95e   :  { %v2257_v57 = vpop.eup %1698  ;;  %v1089_v59 = vmul.f32 1.442695, %v1076_v42  ;;  %v1083_v52 = vmul.f32 1.442695, %v1073_v63 }
 0x95f   :  { %v1107_v60 = vsel %vm375_vm9, %v2257_v57, 0.0  ;;  %v1701_v4 = vpop.eup %1700 }
 0x960   :  { %1108 = vadd.xlane.f32.xlu2 %v1107_v60  ;;  %v1067_v61 = vpop.xlane.xlu2 %1066  ;;  %1702 = vpow2.f32 %v1089_v59  ;;  %v1095_v6 = vsel %vm375_vm9, %v1701_v4, 0.0 }
 0x961   :  { %v1077_v62 = vsub.f32 %v1045_v43, %v1067_v61 }
 0x963   :  { %v1091_v1 = vmul.f32 1.442695, %v1077_v62  ;;  %v1058_v49 = vpop.xlane.xlu1 %1057 }
 0x964   :  { %v1074_v10 = vsub.f32 %v1042_v25, %v1058_v49 }
 0x965   :  { %1704 = vpow2.f32 %v1091_v1 }
 0x966   :  { %v2261_v5 = vpop.eup %1702  ;;  %1706 = vpow2.f32 %v1083_v52  ;;  %v1085_v14 = vmul.f32 1.442695, %v1074_v10 }
 0x967   :  { %v1110_v54 = vsel %vm375_vm9, %v2261_v5, 0.0 }
 0x968   :  { %1096 = vadd.xlane.f32.xlu2 %v1095_v6  ;;  %v1052_v58 = vpop.xlane.xlu2 %1051  ;;  %1111 = vadd.xlane.f32.xlu0 %v1110_v54  ;;  %v1070_v3 = vpop.xlane.xlu0 %1069 }
 0x969   :  { %v1072_v7 = vsub.f32 %v1040_v36, %v1052_v58  ;;  %v1078_v28 = vsub.f32 %v2251_v2, %v1070_v3 }
 0x96b   :  { %v2266_v8 = vpop.eup %1704  ;;  %v1081_v11 = vmul.f32 1.442695, %v1072_v7  ;;  %v1093_v29 = vmul.f32 1.442695, %v1078_v28 }
 0x96c   :  { %v1113_v12 = vsel %vm375_vm9, %v2266_v8, 0.0  ;;  %v1707_v15 = vpop.eup %1706 }
 0x96d   :  { %1114 = vadd.xlane.f32.xlu1 %v1113_v12  ;;  %1708 = vpow2.f32 %v1081_v11  ;;  %v1101_v41 = vsel %vm375_vm9, %v1707_v15, 0.0 }
 0x96e   :  { %1710 = vpow2.f32 %v1085_v14 }
 0x96f   :  { %1712 = vpow2.f32 %v1093_v29 }
 0x973   :  { %v1709_v17 = vpop.eup %1708 }
 0x974   :  { %v1098_v18 = vsel %vm375_vm9, %v1709_v17, 0.0  ;;  %v1711_v19 = vpop.eup %1710 }
 0x975   :  { %1102 = vadd.xlane.f32.xlu1 %v1101_v41  ;;  %1099 = vadd.xlane.f32.xlu2 %v1098_v18  ;;  %v1104_v24 = vsel %vm375_vm9, %v1711_v19, 0.0  ;;  %v1713_v30 = vpop.eup %1712  ;;  %v1578_v41 = vld [vmem:[%s2373_s7 + $0x30] sm:$0xff]  ;;  %v1576_v18 = vld [vmem:[%s2373_s7 + $0x20] sm:$0xff] }
 0x976   :  { %v1116_v31 = vsel %vm375_vm9, %v1713_v30, 0.0 }
 0x97b   :  { %v1626_v22 = vpop.permute.xlu0 %1625 }
 0x97c   :  { %v1627_v23 = vunpack.i.l.bf16 %v1626_v22  ;;  %v1628_v26 = vunpack.i.h.bf16 %v1626_v22 }
 0x97d   :  { %1105 = vadd.xlane.f32.xlu1 %v1104_v24 }
 0x97e   :  { %1163 = vmatpush.msra.mxu2 %v1627_v23 }
 0x980   :  { %1164 = vmatpush.msra.mxu2 %v1628_v26 }
 0x98d   :  { %1630 = vrot.lane.b32.xlu2 %v1624_v27, %s1829_s24 }
 0x996   :  { %1635 = vrot.lane.b32.xlu1 %v1624_v27, %s1837_s3 }
 0x9b6   :  { %1117 = vadd.xlane.f32.xlu2 %v1116_v31 }
 0x9d3   :  { %v1109_v33 = vpop.xlane.xlu2 %1108 }
 0x9db   :  { %v1097_v34 = vpop.xlane.xlu2 %1096  ;;  %v1112_v20 = vpop.xlane.xlu0 %1111 }
 0x9dc   :  { %1714 = vrcp.f32 %v1097_v34 }
 0x9e0   :  { %v1115_v35 = vpop.xlane.xlu1 %1114 }
 0x9e2   :  { %v1715_v37 = vpop.eup %1714 }
 0x9e3   :  { %v1127_v38 = vmul.f32 %v1715_v37, %v1701_v4 }
 0x9e5   :  { %1569 = vmatmul.msk.f32.vlgmr.msra.gmra.mxu3 %vm375_vm9, %v1127_v38 }
 0x9e8   :  { %v1103_v16 = vpop.xlane.xlu1 %1102  ;;  %v1100_v40 = vpop.xlane.xlu2 %1099 }
 0x9e9   :  { %1716 = vrcp.f32 %v1103_v16 }
 0x9ea   :  { %1718 = vrcp.f32 %v1100_v40 }
 0x9eb   :  { %1720 = vrcp.f32 %v1109_v33  ;;  %v1642_v33 = vld [vmem:[%s2372_s6 + $0x1] ss:$0 sm:$0xff] }
 0x9ef   :  { %v1717_v43 = vpop.eup %1716 }
 0x9f0   :  { %v1719_v25 = vpop.eup %1718  ;;  %v1129_v0 = vmul.f32 %v1717_v43, %v1707_v15  ;;  %v1106_v44 = vpop.xlane.xlu1 %1105 }
 0x9f1   :  { %1722 = vrcp.f32 %v1106_v44  ;;  %v1631_v36 = vpop.permute.xlu2 %1630  ;;  %v1128_v45 = vmul.f32 %v1719_v25, %v1709_v17  ;;  %v1721_v2 = vpop.eup %1720  ;;  %v1579_v17 = vld [vmem:[%s2373_s7 + $0x38] sm:$0xff] }
 0x9f2   :  { %v1632_v46 = vunpack.i.l.bf16 %v1631_v36  ;;  %1567 = vmatmul.msk.f32.vlgmr.msra.gmra.mxu2 %vm375_vm9, %v1129_v0  ;;  %1724 = vrcp.f32 %v1112_v20  ;;  %v1633_v32 = vunpack.i.h.bf16 %v1631_v36  ;;  %v1131_v27 = vmul.f32 %v1721_v2, %v2257_v57 }
 0x9f3   :  { %1570 = vmatmul.msk.f32.gmra.mxu3 %vm375_vm9, %v1128_v45  ;;  %1726 = vrcp.f32 %v1115_v35  ;;  %1341 = vmatpush.msrb.mxu2 %v1579_v17 }
 0x9f4   :  { %1227 = vmatpush.msrb.mxu0 %v1632_v46 }
 0x9f5   :  { %1342 = vmatpush.msrb.mxu2 %v1578_v41 }
 0x9f6   :  { %1228 = vmatpush.msrb.mxu0 %v1633_v32 }
 0x9f7   :  { %v1723_v47 = vpop.eup %1722  ;;  %1571 = vmatmul.msk.f32.vlgmr.msrb.gmra.mxu0 %vm375_vm9, %v1131_v27  ;;  %v1591_v27 = vld [vmem:[%s2374_s8 + $0x78] sm:$0xff] }
 0x9f8   :  { %v1130_v48 = vmul.f32 %v1723_v47, %v1711_v19  ;;  %v1725_v51 = vpop.eup %1724  ;;  %v1590_v47 = vld [vmem:[%s2374_s8 + $0x70] sm:$0xff]  ;;  %1425 = vmatpush.msrb.mxu3 %v1591_v27 }
 0x9f9   :  { %v1132_v53 = vmul.f32 %v1725_v51, %v2261_v5  ;;  %v1727_v55 = vpop.eup %1726 }
 0x9fa   :  { %1568 = vmatmul.msk.f32.gmra.mxu2 %vm375_vm9, %v1130_v48  ;;  %v1133_v57 = vmul.f32 %v1727_v55, %v2266_v8  ;;  %v1589_v48 = vld [vmem:[%s2374_s8 + $0x68] sm:$0xff]  ;;  %1426 = vmatpush.msrb.mxu3 %v1590_v47  ;;  %v1586_v55 = vld [vmem:[%s2374_s8 + $0x50] sm:$0xff] }
 0x9fc   :  { %1427 = vmatpush.msrb.mxu3 %v1589_v48 }
 0x9ff   :  { %1572 = vmatmul.msk.f32.gmra.mxu0 %vm375_vm9, %v1132_v53  ;;  %v1588_v53 = vld [vmem:[%s2374_s8 + $0x60] sm:$0xff] }
 0xa00   :  { %1428 = vmatpush.msrb.mxu3 %v1588_v53 }
 0xa08   :  { %v1636_v39 = vpop.permute.xlu1 %1635 }
 0xa09   :  { %v1637_v56 = vunpack.i.l.bf16 %v1636_v39  ;;  %v1638_v42 = vunpack.i.h.bf16 %v1636_v39  ;;  %v1587_v39 = vld [vmem:[%s2374_s8 + $0x58] sm:$0xff] }
 0xa0a   :  { %1429 = vmatpush.msrb.mxu3 %v1587_v39 }
 0xa0b   :  { %1264 = vmatpush.msrb.mxu1 %v1637_v56  ;;  %v1585_v56 = vld [vmem:[%s2374_s8 + $0x48] sm:$0xff] }
 0xa0c   :  { %1430 = vmatpush.msrb.mxu3 %v1586_v55 }
 0xa0d   :  { %1265 = vmatpush.msrb.mxu1 %v1638_v42 }
 0xa0e   :  { %1573 = vmatmul.msk.f32.vlgmr.msrb.gmra.mxu1 %vm375_vm9, %v1133_v57  ;;  %1431 = vmatpush.msrb.mxu3 %v1585_v56 }
 0xa29   :  { %v1118_v59 = vpop.xlane.xlu2 %1117 }
 0xa2a   :  { %1728 = vrcp.f32 %v1118_v59 }
 0xa30   :  { %v1729_v60 = vpop.eup %1728 }
 0xa31   :  { %v1134_v50 = vmul.f32 %v1729_v60, %v1713_v30 }
 0xa33   :  { %1574 = vmatmul.msk.f32.gmra.mxu1 %vm375_vm9, %v1134_v50  ;;  %v1584_v50 = vld [vmem:[%s2374_s8 + $0x40] sm:$0xff] }
 0xa34   :  { %1432 = vmatpush.msrb.mxu3 %v1584_v50 }
 0xa68   :  { %v1195_v62 = vpop.f32.mrf.mxu3 }
 0xa74   :  { %v1230_v1 = vpop.f32.mrf.mxu0 }
 0xa75   :  { %v1166_v61 = vpop.f32.mrf.mxu2 }
 0xa76   :  { %v1196_v63 = vadd.f32 %v1195_v62, %v1166_v61  ;;  %v1198_v7 = vpop.f32.mrf.mxu3 }
 0xa78   :  { %v1236_v4 = vadd.f32 %v1230_v1, %v1196_v63 }
 0xa7c   :  { %v1233_v10 = vpop.f32.mrf.mxu0 }
 0xa7d   :  { %v1169_v58 = vpop.f32.mrf.mxu2 }
 0xa7e   :  { %v1199_v8 = vadd.f32 %v1198_v7, %v1169_v58 }
 0xa80   :  { %v1237_v11 = vadd.f32 %v1233_v10, %v1199_v8 }
 0xa8b   :  { %v1267_v5 = vpop.f32.mrf.mxu1 }
 0xa8c   :  { %v1273_v52 = vadd.f32 %v1267_v5, %v1236_v4 }
 0xa8e   :  { %v2289_v6 = vadd.f32 %v1273_v52, %v2155_v9 }
 0xa90   :  { %v1279_v49 = vmul.f32 %v2289_v6, %v2289_v6 }
 0xa92   :  { %v1281_v54 = vsel %vm85_vm0, %v1279_v49, 0.0 }
 0xa93   :  { %1282 = vadd.xlane.f32.xlu1 %v1281_v54 }
 0xab0   :  { %v1270_v12 = vpop.f32.mrf.mxu1 }
 0xab1   :  { %v1274_v14 = vadd.f32 %v1270_v12, %v1237_v11 }
 0xab3   :  { %v2295_v15 = vadd.f32 %v1274_v14, %v2161_v13  ;;  %v1577_v13 = vld [vmem:[%s2373_s7 + $0x28] sm:$0xff] }
 0xab4   :  { %1343 = vmatpush.msrb.mxu2 %v1577_v13 }
 0xab5   :  { %v1280_v9 = vmul.f32 %v2295_v15, %v2295_v15 }
 0xab6   :  { %1344 = vmatpush.msrb.mxu2 %v1576_v18 }
 0xab7   :  { %v1284_v3 = vsel %vm85_vm0, %v1280_v9, 0.0 }
 0xab8   :  { %1285 = vadd.xlane.f32.xlu0 %v1284_v3 }
 0xb06   :  { %v1283_v19 = vpop.xlane.xlu1 %1282 }
 0xb07   :  { %v1287_v22 = vmul.f32 %v1283_v19, %v1947_v21 }
 0xb09   :  { %v1289_v23 = vadd.f32 1e-06, %v1287_v22 }
 0xb0b   :  { %1730 = vrsqrt.f32 %v1289_v23  ;;  %vm1297_vm9 = vweird.f32 %v1289_v23 }
 0xb11   :  { %v1731_v24 = vpop.eup %1730 }
 0xb12   :  { %v1292_v26 = vmul.f32 %v1731_v24, %v1289_v23  ;;  %vm1298_vm8 = vweird.f32 %v1731_v24 }
 0xb13   :  { %vm1299_vm3 = vmor %vm1297_vm9, %vm1298_vm8 }
 0xb14   :  { %v1293_v28 = vmul.f32 %v1731_v24, %v1292_v26 }
 0xb16   :  { %v1294_v29 = vmul.f32 0.5, %v1293_v28 }
 0xb18   :  { %v1295_v30 = vsub.f32 1.5, %v1294_v29 }
 0xb1a   :  { %v1296_v31 = vmul.f32 %v1731_v24, %v1295_v30 }
 0xb1c   :  { %v1300_v34 = vsel %vm1299_vm3, %v1731_v24, %v1296_v31 }
 0xb1d   :  { %v1311_v35 = vmul.f32 %v1300_v34, %v2289_v6 }
 0xb1f   :  { %v1316_v37 = vmul.f32 %v1642_v33, %v1311_v35 }
 0xb21   :  { %1580 = vmatmul.msk.f32.vlgmr.msrb.gmra.mxu2 %vm85_vm0, %v1316_v37 }
 0xb2b   :  { %v1286_v38 = vpop.xlane.xlu0 %1285 }
 0xb2c   :  { %v1288_v16 = vmul.f32 %v1286_v38, %v1947_v21 }
 0xb2e   :  { %v1290_v40 = vadd.f32 1e-06, %v1288_v16 }
 0xb30   :  { %1732 = vrsqrt.f32 %v1290_v40  ;;  %vm1307_vm5 = vweird.f32 %v1290_v40 }
 0xb36   :  { %v1733_v43 = vpop.eup %1732 }
 0xb37   :  { %v1302_v25 = vmul.f32 %v1733_v43, %v1290_v40  ;;  %vm1308_vm4 = vweird.f32 %v1733_v43 }
 0xb38   :  { %vm1309_vm6 = vmor %vm1307_vm5, %vm1308_vm4 }
 0xb39   :  { %v1303_v0 = vmul.f32 %v1733_v43, %v1302_v25 }
 0xb3b   :  { %v1304_v44 = vmul.f32 0.5, %v1303_v0 }
 0xb3d   :  { %v1305_v20 = vsub.f32 1.5, %v1304_v44 }
 0xb3f   :  { %v1306_v36 = vmul.f32 %v1733_v43, %v1305_v20 }
 0xb41   :  { %v1310_v45 = vsel %vm1309_vm6, %v1733_v43, %v1306_v36 }
 0xb42   :  { %v1312_v2 = vmul.f32 %v1310_v45, %v2295_v15 }
 0xb44   :  { %v1317_v46 = vmul.f32 %v1642_v33, %v1312_v2 }
 0xb46   :  { %1581 = vmatmul.msk.f32.gmra.mxu2 %vm85_vm0, %v1317_v46  ;;  %v1643_v46 = vld [vmem:[%s2375_s9] ss:$0 sm:$0xff]  ;;  %s1490_s9 = sshll.u32 %s2376_s10, 4  ;;  %s1491_s9 = int_to_ptr.hbm [resolvable:$true] %s1490_s9 }
 0xba4   :  { %v1346_v32 = vpop.f32.mrf.mxu2 }
 0xba5   :  { %1394 = vrot.lane.b32.xlu0 %v1346_v32, %s1829_s24  ;;  %v1582_v42 = vmul.f32 -1.442695, %v1346_v32 }
 0xba7   :  { %1734 = vpow2.f32 %v1582_v42 }
 0xbad   :  { %v1735_v57 = vpop.eup %1734 }
 0xbae   :  { %v1358_v59 = vadd.f32 1.0, %v1735_v57 }
 0xbb0   :  { %1736 = vrcp.f32 %v1358_v59  ;;  %v1371_v54 = vand.u32 2147483648, %v1358_v59  ;;  %vm1365_vm11 = vweird.f32 %v1358_v59  ;;  %v1369_v7 = vand.u32 2147483647, %v1358_v59 }
 0xbb2   :  { %v1372_v10 = vor.u32 1.1754944e-38, %v1371_v54  ;;  %vm1370_vm13 = vcmp.eq.f32.partialorder %v1369_v7, 8.507059e+37 }
 0xbb6   :  { %v1737_v61 = vpop.eup %1736 }
 0xbb7   :  { %v1361_v63 = vmul.f32 %v1737_v61, %v1358_v59  ;;  %vm1366_vm7 = vweird.f32 %v1737_v61 }
 0xbb8   :  { %vm1367_vm12 = vmor %vm1365_vm11, %vm1366_vm7 }
 0xbb9   :  { %v1362_v4 = vsub.f32 1.0, %v1361_v63 }
 0xbbb   :  { %v1363_v5 = vmul.f32 %v1737_v61, %v1362_v4 }
 0xbbd   :  { %v1364_v49 = vadd.f32 %v1737_v61, %v1363_v5 }
 0xbbf   :  { %v1368_v8 = vsel %vm1367_vm12, %v1737_v61, %v1364_v49 }
 0xbc0   :  { %v1373_v12 = vsel %vm1370_vm13, %v1372_v10, %v1368_v8 }
 0xbc1   :  { %v1390_v9 = vmul.f32 %v1373_v12, %v1346_v32 }
 0xbc9   :  { %v1349_v51 = vpop.f32.mrf.mxu2 }
 0xbca   :  { %1396 = vrot.lane.b32.xlu2 %v1349_v51, %s1829_s24  ;;  %v1583_v60 = vmul.f32 -1.442695, %v1349_v51 }
 0xbcc   :  { %1738 = vpow2.f32 %v1583_v60 }
 0xbd2   :  { %v1739_v62 = vpop.eup %1738 }
 0xbd3   :  { %v1359_v1 = vadd.f32 1.0, %v1739_v62 }
 0xbd5   :  { %1740 = vrcp.f32 %v1359_v1  ;;  %v1386_v13 = vand.u32 2147483648, %v1359_v1  ;;  %vm1380_vm15 = vweird.f32 %v1359_v1  ;;  %v1384_v18 = vand.u32 2147483647, %v1359_v1 }
 0xbd7   :  { %v1387_v22 = vor.u32 1.1754944e-38, %v1386_v13  ;;  %vm1385_vm2 = vcmp.eq.f32.partialorder %v1384_v18, 8.507059e+37 }
 0xbdb   :  { %v1741_v52 = vpop.eup %1740 }
 0xbdc   :  { %v1376_v58 = vmul.f32 %v1741_v52, %v1359_v1  ;;  %vm1381_vm14 = vweird.f32 %v1741_v52 }
 0xbdd   :  { %vm1382_vm1 = vmor %vm1380_vm15, %vm1381_vm14 }
 0xbde   :  { %v1377_v11 = vsub.f32 1.0, %v1376_v58 }
 0xbe0   :  { %v1378_v14 = vmul.f32 %v1741_v52, %v1377_v11 }
 0xbe2   :  { %v1379_v41 = vadd.f32 %v1741_v52, %v1378_v14 }
 0xbe4   :  { %v1383_v19 = vsel %vm1382_vm1, %v1741_v52, %v1379_v41 }
 0xbe5   :  { %v1388_v23 = vsel %vm1385_vm2, %v1387_v22, %v1383_v19 }
 0xbe6   :  { %v1391_v24 = vmul.f32 %v1388_v23, %v1349_v51 }
 0xc17   :  { %v1395_v3 = vpop.permute.xlu0 %1394 }
 0xc18   :  { %v1400_v17 = vmul.f32 %v1395_v3, %v1390_v9 }
 0xc1a   :  { %1592 = vmatmul.msk.f32.vlgmr.msrb.gmra.mxu3 %vm737_vm10, %v1400_v17 }
 0xc24   :  { %v1397_v26 = vpop.permute.xlu2 %1396 }
 0xc25   :  { %v1401_v28 = vmul.f32 %v1397_v26, %v1391_v24 }
 0xc27   :  { %1593 = vmatmul.msk.f32.gmra.mxu3 %vm737_vm10, %v1401_v28 }
 0xc9d   :  { %v1434_v29 = vpop.f32.mrf.mxu3 }
 0xc9e   :  { %v1440_v30 = vadd.f32 %v1434_v29, %v2289_v6 }
 0xca0   :  { %v1443_v31 = vmul.f32 %v1440_v30, %v1440_v30 }
 0xca2   :  { %v1445_v33 = vsel %vm85_vm0, %v1443_v31, 0.0 }
 0xca3   :  { %1446 = vadd.xlane.f32.xlu1 %v1445_v33 }
 0xcaa   :  { %v1437_v34 = vpop.f32.mrf.mxu3 }
 0xcab   :  { %v1441_v35 = vadd.f32 %v1437_v34, %v2295_v15 }
 0xcad   :  { %v1444_v37 = vmul.f32 %v1441_v35, %v1441_v35 }
 0xcaf   :  { %v1448_v38 = vsel %vm85_vm0, %v1444_v37, 0.0 }
 0xcb0   :  { %1449 = vadd.xlane.f32.xlu0 %v1448_v38 }
 0xd16   :  { %v1447_v16 = vpop.xlane.xlu1 %1446 }
 0xd17   :  { %v1451_v40 = vmul.f32 %v1447_v16, %v1947_v21 }
 0xd19   :  { %v1453_v43 = vadd.f32 1e-06, %v1451_v40 }
 0xd1b   :  { %1742 = vrsqrt.f32 %v1453_v43  ;;  %vm1461_vm8 = vweird.f32 %v1453_v43 }
 0xd21   :  { %v1743_v25 = vpop.eup %1742 }
 0xd22   :  { %v1456_v0 = vmul.f32 %v1743_v25, %v1453_v43  ;;  %vm1462_vm10 = vweird.f32 %v1743_v25 }
 0xd23   :  { %v1450_v6 = vpop.xlane.xlu0 %1449  ;;  %vm1463_vm9 = vmor %vm1461_vm8, %vm1462_vm10 }
 0xd24   :  { %v1457_v44 = vmul.f32 %v1743_v25, %v1456_v0  ;;  %v1452_v20 = vmul.f32 %v1450_v6, %v1947_v21 }
 0xd26   :  { %v1458_v36 = vmul.f32 0.5, %v1457_v44  ;;  %v1454_v45 = vadd.f32 1e-06, %v1452_v20 }
 0xd28   :  { %v1459_v2 = vsub.f32 1.5, %v1458_v36  ;;  %1744 = vrsqrt.f32 %v1454_v45  ;;  %vm1471_vm4 = vweird.f32 %v1454_v45 }
 0xd2a   :  { %v1460_v15 = vmul.f32 %v1743_v25, %v1459_v2 }
 0xd2c   :  { %v1464_v32 = vsel %vm1463_vm9, %v1743_v25, %v1460_v15 }
 0xd2d   :  { %v1475_v27 = vmul.f32 %v1464_v32, %v1440_v30 }
 0xd2e   :  { %v1745_v47 = vpop.eup %1744 }
 0xd2f   :  { %v1480_v48 = vmul.f32 %v1643_v46, %v1475_v27  ;;  %v1466_v51 = vmul.f32 %v1745_v47, %v1454_v45  ;;  %vm1472_vm3 = vweird.f32 %v1745_v47 }
 0xd30   :  { %vm1473_vm5 = vmor %vm1471_vm4, %vm1472_vm3 }
 0xd31   :  { %1482 = vst.msk [vmem:[#allocation7] sm:$0xff] %vm85_vm0, %v1480_v48  ;;  %v1467_v21 = vmul.f32 %v1745_v47, %v1466_v51 }
 0xd33   :  { %v1468_v53 = vmul.f32 0.5, %v1467_v21 }
 0xd35   :  { %v1469_v39 = vsub.f32 1.5, %v1468_v53 }
 0xd37   :  { %v1470_v55 = vmul.f32 %v1745_v47, %v1469_v39 }
 0xd39   :  { %v1474_v56 = vsel %vm1473_vm5, %v1745_v47, %v1470_v55 }
 0xd3a   :  { %v1476_v42 = vmul.f32 %v1474_v56, %v1441_v35 }
 0xd3c   :  { %v1481_v57 = vmul.f32 %v1643_v46, %v1476_v42 }
 0xd3e   :  { %1483 = vst.msk [vmem:[#allocation7 + $0x8] sm:$0xff] %vm85_vm0, %v1481_v57 }
 0xd3f   :  { %1496 = dma.vmem_to_hbm [thread:$0]  %s1489_s26, 256, %s1491_s9, [#allocation4], %s1825_s21, %s1825_s21, %s1826_s22  }
 0xd40   :  { %1822 = dma.done.wait [#allocation4], 256  }
 0xd41   :  { %1823 = vsyncadd [#allocation4], 4294967040 }
 0xd42   :  { %1501 = vsyncpa [#allocation3], 1 }
 0xd43   :  { %1502 = vsyncpa [#allocation6], 1 }
 0xd44   :  { %1503 = vsyncpa [#allocation4], 1 }

</bundles_post_ra>
